<compile_context>
chip_gen: v7x
topology: tpu7x:2x2x1
jax: 0.10.0
libtpu: 0.0.40
codegen_flags: <defaults>
</compile_context>

<pallas_src>
import math

import jax
import jax.numpy as jnp
from jax.experimental import pallas as pl
from jax.experimental.pallas import tpu as pltpu

# ----------------------------- config (small) --------------------------------
B = 2          # batch
S = 16         # sequence length (num_pixels)
E = 128        # q_dim = k_dim = embed_dim
H = 4          # n_heads
D = 32         # qkv_dim per head
HD = H * D     # 128
BS = B * S     # 32
LN_EPS = 1e-5
NEG_INF = -1.0e9       # matches torch masked_fill_(-1e9)
CROSS_NEG = -2.0e9     # cross-batch block penalty (dominates even fully-masked rows)


# ------------------------------ kernel ----------------------------------------
def _layernorm(x):
    # nn.LayerNorm(embed_dim) is re-created in forward -> weight=1, bias=0.
    mean = jnp.mean(x, axis=-1, keepdims=True)
    var = jnp.mean((x - mean) ** 2, axis=-1, keepdims=True)
    return (x - mean) * jax.lax.rsqrt(var + LN_EPS)


def mha_kernel(x_ref, mask_ref, wqkv_ref, bqkv_ref, wo_ref, bo_ref,
               out_ref, att_ref):
    """Fused multi-head self-attention + residual + LayerNorm for the whole batch.

    x_ref:    (B*S, E)            flattened activations
    mask_ref: (B*S, B*S)          additive mask (block-diagonal over batches)
    wqkv_ref: (E, 3*HD), bqkv_ref: (1, 3*HD)   packed Q|K|V projection
    wo_ref:   (HD, E),   bo_ref:   (1, E)
    out_ref:  (B*S, E)            LayerNorm(w_o(ctx) + x)
    att_ref:  (B*S, H*B*S)        lane-dense attention weights, head-concatenated
    """
    x = x_ref[...]                                   # (32, 128)
    mask_add = mask_ref[...]                         # (32, 32)

    # Single packed QKV projection: (32,128) @ (128,384) on the MXU.
    qkv = jnp.dot(x, wqkv_ref[...], preferred_element_type=jnp.float32) + bqkv_ref[...]

    scale = 1.0 / math.sqrt(D)
    att_parts = []
    ctx_parts = []
    for h in range(H):                               # static unrolled, H = 4
        q_h = qkv[:, h * D:(h + 1) * D]              # (32, 32)
        k_h = qkv[:, HD + h * D:HD + (h + 1) * D]
        v_h = qkv[:, 2 * HD + h * D:2 * HD + (h + 1) * D]

        # Scores over the flattened (B*S) rows/cols; cross-batch blocks are killed
        # by the additive mask, so softmax stays exactly per-batch.
        s = jnp.dot(q_h, k_h.T, preferred_element_type=jnp.float32) * scale + mask_add
        m = jnp.max(s, axis=-1, keepdims=True)
        e = jnp.exp(s - m)
        denom = jnp.sum(e, axis=-1, keepdims=True)
        att_h = e * pl.reciprocal(denom, approx=True)          # EUP reciprocal
        att_parts.append(att_h)
        ctx_parts.append(jnp.dot(att_h, v_h, preferred_element_type=jnp.float32))

    # Lane-dense (32, 128) attention output: unmasked full-width stores.
    att_ref[...] = jnp.concatenate(att_parts, axis=-1).astype(att_ref.dtype)

    # Single full-K output projection: (32,128) @ (128,128).
    ctx = jnp.concatenate(ctx_parts, axis=-1)                  # (32, HD)
    out = jnp.dot(ctx, wo_ref[...], preferred_element_type=jnp.float32) + bo_ref[...] + x
    out_ref[...] = _layernorm(out).astype(out_ref.dtype)


# ------------------------------ wrapper ----------------------------------------
@jax.jit
def multi_head_attention(x, att_mask, params):
    """MultiHeadAttention.forward specialized to self-attention (Q = K = V = x).

    x:        (B, S, E) float32
    att_mask: (B, S, S) bool, True = masked
    returns:  (out (B, S, E), att (B, H, S, S))
    """
    wq, bq, wk, bk, wv, bv, wo, bo = params

    # Pack Q|K|V weights so the kernel does one (E, 3*HD) matmul.
    wqkv = jnp.concatenate([wq, wk, wv], axis=1)     # (E, 3*HD)
    bqkv = jnp.concatenate([bq, bk, bv], axis=1)     # (1, 3*HD)

    x_flat = x.reshape(BS, E)

    # Additive mask over the flattened (B*S, B*S) score matrix:
    #   diagonal (same-batch) blocks: 0 where unmasked, NEG_INF where user-masked
    #   off-diagonal (cross-batch) blocks: CROSS_NEG (never attended)
    same_b = (jnp.arange(B)[:, None, None, None] ==
              jnp.arange(B)[None, None, :, None])                       # (B,1,B,1)
    user = jnp.where(att_mask, NEG_INF, 0.0)[:, :, None, :]             # (B,S,1,S)
    mask_add = jnp.where(same_b, user, CROSS_NEG)                       # (B,S,B,S)
    mask_add = mask_add.reshape(BS, BS).astype(jnp.float32)

    vmem = pl.BlockSpec(memory_space=pltpu.MemorySpace.VMEM)
    out_flat, att_cat = pl.pallas_call(
        mha_kernel,
        out_shape=(jax.ShapeDtypeStruct((BS, E), jnp.float32),
                   jax.ShapeDtypeStruct((BS, H * BS), jnp.float32)),
        in_specs=[vmem] * 6,
        out_specs=(vmem, vmem),
    )(x_flat, mask_add, wqkv, bqkv, wo, bo)

    out = out_flat.reshape(B, S, E)

    # Recover (B, H, S, S) attention from the lane-dense buffer:
    # att_cat[b*S+i, h*BS + b2*S + j] = att(head h, query (b,i), key (b2,j)).
    att_full = att_cat.reshape(B, S, H, B, S)
    att = att_full[jnp.arange(B), :, :, jnp.arange(B), :]   # diagonal b==b2 -> (B,S,H,S)
    att = att.transpose(0, 2, 1, 3)                         # (B, H, S, S)
    return out, att


# ------------------------------ reference (pure JAX) ---------------------------
def multi_head_attention_ref(x, att_mask, params):
    wq, bq, wk, bk, wv, bv, wo, bo = params
    q = (x @ wq + bq).reshape(B, S, H, D).transpose(0, 2, 1, 3)
    k = (x @ wk + bk).reshape(B, S, H, D).transpose(0, 2, 1, 3)
    v = (x @ wv + bv).reshape(B, S, H, D).transpose(0, 2, 1, 3)
    scores = jnp.einsum('bhqd,bhkd->bhqk', q, k) / math.sqrt(D)
    scores = jnp.where(att_mask[:, None], NEG_INF, scores)
    att = jax.nn.softmax(scores, axis=-1)
    ctx = jnp.einsum('bhqk,bhkd->bhqd', att, v)
    ctx = ctx.transpose(0, 2, 1, 3).reshape(B, S, HD)
    out = ctx @ wo + bo + x
    mean = out.mean(-1, keepdims=True)
    var = ((out - mean) ** 2).mean(-1, keepdims=True)
    out = (out - mean) / jnp.sqrt(var + LN_EPS)
    return out, att


# ------------------------------ main -------------------------------------------
if __name__ == "__main__":
    key = jax.random.PRNGKey(0)
    keys = jax.random.split(key, 10)

    def uinit(k, shape, fan_in):
        bound = 1.0 / math.sqrt(fan_in)
        return jax.random.uniform(k, shape, jnp.float32, -bound, bound)

    # PyTorch-like Linear init; weights stored transposed (y = x @ W), biases (1, out).
    wq = uinit(keys[0], (E, HD), E); bq = uinit(keys[1], (1, HD), E)
    wk = uinit(keys[2], (E, HD), E); bk = uinit(keys[3], (1, HD), E)
    wv = uinit(keys[4], (E, HD), E); bv = uinit(keys[5], (1, HD), E)
    wo = uinit(keys[6], (HD, E), HD); bo = uinit(keys[7], (1, E), HD)
    params = (wq, bq, wk, bk, wv, bv, wo, bo)

    x = jax.random.normal(keys[8], (B, S, E), jnp.float32)
    # Padding-style attention mask: batch 0 unmasked, batch 1 masks the last 3 keys.
    key_valid = jnp.ones((B, S), jnp.bool_).at[1, S - 3:].set(False)
    att_mask = jnp.broadcast_to(~key_valid[:, None, :], (B, S, S))   # True = masked

    out, att = multi_head_attention(x, att_mask, params)
    jax.block_until_ready((out, att))

    out_r, att_r = multi_head_attention_ref(x, att_mask, params)
    # Tolerance accommodates the EUP approx-reciprocal used for softmax normalization.
    assert jnp.allclose(att, att_r, atol=2e-2, rtol=2e-2), "attention mismatch"
    assert jnp.allclose(out, out_r, atol=2e-2, rtol=2e-2), "output mismatch"

    print("KERNEL_OK")
</pallas_src>

<mosaic_0001>
module attributes {stable_mosaic.version = 11 : i64} {
  func.func @mha_kernel(%arg0: memref<32x128xf32, #tpu.memory_space<vmem>>, %arg1: memref<32x32xf32, #tpu.memory_space<vmem>>, %arg2: memref<128x384xf32, #tpu.memory_space<vmem>>, %arg3: memref<1x384xf32, #tpu.memory_space<vmem>>, %arg4: memref<128x128xf32, #tpu.memory_space<vmem>>, %arg5: memref<1x128xf32, #tpu.memory_space<vmem>>, %arg6: memref<32x128xf32, #tpu.memory_space<vmem>>, %arg7: memref<32x128xf32, #tpu.memory_space<vmem>>) attributes {dimension_semantics = [], scalar_prefetch = 0 : i64, scratch_operands = 0 : i64, tpu.core_type = #tpu.core_type<tc>} {
    %c0 = arith.constant 0 : index
    %c0_0 = arith.constant 0 : index
    %0 = vector.load %arg0[%c0, %c0_0] : memref<32x128xf32, #tpu.memory_space<vmem>>, vector<32x128xf32>
    %c0_1 = arith.constant 0 : index
    %c0_2 = arith.constant 0 : index
    %1 = vector.load %arg1[%c0_1, %c0_2] : memref<32x32xf32, #tpu.memory_space<vmem>>, vector<32x32xf32>
    %c0_3 = arith.constant 0 : index
    %c0_4 = arith.constant 0 : index
    %2 = vector.load %arg2[%c0_3, %c0_4] : memref<128x384xf32, #tpu.memory_space<vmem>>, vector<128x384xf32>
    %cst = arith.constant dense<0.000000e+00> : vector<32x384xf32>
    %3 = tpu.matmul %0, %2, %cst {dimension_numbers = #tpu.dot_dimension_numbers<[1], [0], [0], [1], [0, 0, 1, 1], [], []>} : vector<32x128xf32>, vector<128x384xf32>, vector<32x384xf32> -> vector<32x384xf32>
    %c0_5 = arith.constant 0 : index
    %c0_6 = arith.constant 0 : index
    %4 = vector.load %arg3[%c0_5, %c0_6] : memref<1x384xf32, #tpu.memory_space<vmem>>, vector<1x384xf32>
    %5 = vector.broadcast %4 : vector<1x384xf32> to vector<32x384xf32>
    %6 = arith.addf %3, %5 : vector<32x384xf32>
    %7 = vector.extract_strided_slice %6 {offsets = [0, 0], sizes = [32, 32], strides = [1, 1]} : vector<32x384xf32> to vector<32x32xf32>
    %8 = vector.extract_strided_slice %6 {offsets = [0, 128], sizes = [32, 32], strides = [1, 1]} : vector<32x384xf32> to vector<32x32xf32>
    %9 = vector.extract_strided_slice %6 {offsets = [0, 256], sizes = [32, 32], strides = [1, 1]} : vector<32x384xf32> to vector<32x32xf32>
    %10 = tpu.transpose %8, [1, 0] : vector<32x32xf32> -> vector<32x32xf32>
    %cst_7 = arith.constant dense<0.000000e+00> : vector<32x32xf32>
    %11 = tpu.matmul %7, %10, %cst_7 {dimension_numbers = #tpu.dot_dimension_numbers<[1], [0], [0], [1], [0, 0, 1, 1], [], []>} : vector<32x32xf32>, vector<32x32xf32>, vector<32x32xf32> -> vector<32x32xf32>
    %cst_8 = arith.constant 0.176776692 : f32
    %12 = vector.broadcast %cst_8 : f32 to vector<32x32xf32>
    %13 = arith.mulf %11, %12 : vector<32x32xf32>
    %14 = arith.addf %13, %1 : vector<32x32xf32>
    %cst_9 = arith.constant dense<0xFF800000> : vector<32xf32>
    %15 = vector.multi_reduction <maximumf>, %14, %cst_9 [1] : vector<32x32xf32> to vector<32xf32>
    %16 = vector.shape_cast %15 : vector<32xf32> to vector<32x1xf32>
    %17 = vector.broadcast %16 : vector<32x1xf32> to vector<32x32xf32>
    %18 = arith.subf %14, %17 : vector<32x32xf32>
    %19 = math.exp %18 : vector<32x32xf32>
    %cst_10 = arith.constant dense<0.000000e+00> : vector<32xf32>
    %20 = vector.multi_reduction <add>, %19, %cst_10 [1] : vector<32x32xf32> to vector<32xf32>
    %21 = vector.shape_cast %20 : vector<32xf32> to vector<32x1xf32>
    %22 = tpu.reciprocal %21 {approx = true} : vector<32x1xf32> -> vector<32x1xf32>
    %23 = vector.broadcast %22 : vector<32x1xf32> to vector<32x32xf32>
    %24 = arith.mulf %19, %23 : vector<32x32xf32>
    %cst_11 = arith.constant dense<0.000000e+00> : vector<32x32xf32>
    %25 = tpu.matmul %24, %9, %cst_11 {dimension_numbers = #tpu.dot_dimension_numbers<[1], [0], [0], [1], [0, 0, 1, 1], [], []>} : vector<32x32xf32>, vector<32x32xf32>, vector<32x32xf32> -> vector<32x32xf32>
    %26 = vector.extract_strided_slice %6 {offsets = [0, 32], sizes = [32, 32], strides = [1, 1]} : vector<32x384xf32> to vector<32x32xf32>
    %27 = vector.extract_strided_slice %6 {offsets = [0, 160], sizes = [32, 32], strides = [1, 1]} : vector<32x384xf32> to vector<32x32xf32>
    %28 = vector.extract_strided_slice %6 {offsets = [0, 288], sizes = [32, 32], strides = [1, 1]} : vector<32x384xf32> to vector<32x32xf32>
    %29 = tpu.transpose %27, [1, 0] : vector<32x32xf32> -> vector<32x32xf32>
    %cst_12 = arith.constant dense<0.000000e+00> : vector<32x32xf32>
    %30 = tpu.matmul %26, %29, %cst_12 {dimension_numbers = #tpu.dot_dimension_numbers<[1], [0], [0], [1], [0, 0, 1, 1], [], []>} : vector<32x32xf32>, vector<32x32xf32>, vector<32x32xf32> -> vector<32x32xf32>
    %cst_13 = arith.constant 0.176776692 : f32
    %31 = vector.broadcast %cst_13 : f32 to vector<32x32xf32>
    %32 = arith.mulf %30, %31 : vector<32x32xf32>
    %33 = arith.addf %32, %1 : vector<32x32xf32>
    %cst_14 = arith.constant dense<0xFF800000> : vector<32xf32>
    %34 = vector.multi_reduction <maximumf>, %33, %cst_14 [1] : vector<32x32xf32> to vector<32xf32>
    %35 = vector.shape_cast %34 : vector<32xf32> to vector<32x1xf32>
    %36 = vector.broadcast %35 : vector<32x1xf32> to vector<32x32xf32>
    %37 = arith.subf %33, %36 : vector<32x32xf32>
    %38 = math.exp %37 : vector<32x32xf32>
    %cst_15 = arith.constant dense<0.000000e+00> : vector<32xf32>
    %39 = vector.multi_reduction <add>, %38, %cst_15 [1] : vector<32x32xf32> to vector<32xf32>
    %40 = vector.shape_cast %39 : vector<32xf32> to vector<32x1xf32>
    %41 = tpu.reciprocal %40 {approx = true} : vector<32x1xf32> -> vector<32x1xf32>
    %42 = vector.broadcast %41 : vector<32x1xf32> to vector<32x32xf32>
    %43 = arith.mulf %38, %42 : vector<32x32xf32>
    %cst_16 = arith.constant dense<0.000000e+00> : vector<32x32xf32>
    %44 = tpu.matmul %43, %28, %cst_16 {dimension_numbers = #tpu.dot_dimension_numbers<[1], [0], [0], [1], [0, 0, 1, 1], [], []>} : vector<32x32xf32>, vector<32x32xf32>, vector<32x32xf32> -> vector<32x32xf32>
    %45 = vector.extract_strided_slice %6 {offsets = [0, 64], sizes = [32, 32], strides = [1, 1]} : vector<32x384xf32> to vector<32x32xf32>
    %46 = vector.extract_strided_slice %6 {offsets = [0, 192], sizes = [32, 32], strides = [1, 1]} : vector<32x384xf32> to vector<32x32xf32>
    %47 = vector.extract_strided_slice %6 {offsets = [0, 320], sizes = [32, 32], strides = [1, 1]} : vector<32x384xf32> to vector<32x32xf32>
    %48 = tpu.transpose %46, [1, 0] : vector<32x32xf32> -> vector<32x32xf32>
    %cst_17 = arith.constant dense<0.000000e+00> : vector<32x32xf32>
    %49 = tpu.matmul %45, %48, %cst_17 {dimension_numbers = #tpu.dot_dimension_numbers<[1], [0], [0], [1], [0, 0, 1, 1], [], []>} : vector<32x32xf32>, vector<32x32xf32>, vector<32x32xf32> -> vector<32x32xf32>
    %cst_18 = arith.constant 0.176776692 : f32
    %50 = vector.broadcast %cst_18 : f32 to vector<32x32xf32>
    %51 = arith.mulf %49, %50 : vector<32x32xf32>
    %52 = arith.addf %51, %1 : vector<32x32xf32>
    %cst_19 = arith.constant dense<0xFF800000> : vector<32xf32>
    %53 = vector.multi_reduction <maximumf>, %52, %cst_19 [1] : vector<32x32xf32> to vector<32xf32>
    %54 = vector.shape_cast %53 : vector<32xf32> to vector<32x1xf32>
    %55 = vector.broadcast %54 : vector<32x1xf32> to vector<32x32xf32>
    %56 = arith.subf %52, %55 : vector<32x32xf32>
    %57 = math.exp %56 : vector<32x32xf32>
    %cst_20 = arith.constant dense<0.000000e+00> : vector<32xf32>
    %58 = vector.multi_reduction <add>, %57, %cst_20 [1] : vector<32x32xf32> to vector<32xf32>
    %59 = vector.shape_cast %58 : vector<32xf32> to vector<32x1xf32>
    %60 = tpu.reciprocal %59 {approx = true} : vector<32x1xf32> -> vector<32x1xf32>
    %61 = vector.broadcast %60 : vector<32x1xf32> to vector<32x32xf32>
    %62 = arith.mulf %57, %61 : vector<32x32xf32>
    %cst_21 = arith.constant dense<0.000000e+00> : vector<32x32xf32>
    %63 = tpu.matmul %62, %47, %cst_21 {dimension_numbers = #tpu.dot_dimension_numbers<[1], [0], [0], [1], [0, 0, 1, 1], [], []>} : vector<32x32xf32>, vector<32x32xf32>, vector<32x32xf32> -> vector<32x32xf32>
    %64 = vector.extract_strided_slice %6 {offsets = [0, 96], sizes = [32, 32], strides = [1, 1]} : vector<32x384xf32> to vector<32x32xf32>
    %65 = vector.extract_strided_slice %6 {offsets = [0, 224], sizes = [32, 32], strides = [1, 1]} : vector<32x384xf32> to vector<32x32xf32>
    %66 = vector.extract_strided_slice %6 {offsets = [0, 352], sizes = [32, 32], strides = [1, 1]} : vector<32x384xf32> to vector<32x32xf32>
    %67 = tpu.transpose %65, [1, 0] : vector<32x32xf32> -> vector<32x32xf32>
    %cst_22 = arith.constant dense<0.000000e+00> : vector<32x32xf32>
    %68 = tpu.matmul %64, %67, %cst_22 {dimension_numbers = #tpu.dot_dimension_numbers<[1], [0], [0], [1], [0, 0, 1, 1], [], []>} : vector<32x32xf32>, vector<32x32xf32>, vector<32x32xf32> -> vector<32x32xf32>
    %cst_23 = arith.constant 0.176776692 : f32
    %69 = vector.broadcast %cst_23 : f32 to vector<32x32xf32>
    %70 = arith.mulf %68, %69 : vector<32x32xf32>
    %71 = arith.addf %70, %1 : vector<32x32xf32>
    %cst_24 = arith.constant dense<0xFF800000> : vector<32xf32>
    %72 = vector.multi_reduction <maximumf>, %71, %cst_24 [1] : vector<32x32xf32> to vector<32xf32>
    %73 = vector.shape_cast %72 : vector<32xf32> to vector<32x1xf32>
    %74 = vector.broadcast %73 : vector<32x1xf32> to vector<32x32xf32>
    %75 = arith.subf %71, %74 : vector<32x32xf32>
    %76 = math.exp %75 : vector<32x32xf32>
    %cst_25 = arith.constant dense<0.000000e+00> : vector<32xf32>
    %77 = vector.multi_reduction <add>, %76, %cst_25 [1] : vector<32x32xf32> to vector<32xf32>
    %78 = vector.shape_cast %77 : vector<32xf32> to vector<32x1xf32>
    %79 = tpu.reciprocal %78 {approx = true} : vector<32x1xf32> -> vector<32x1xf32>
    %80 = vector.broadcast %79 : vector<32x1xf32> to vector<32x32xf32>
    %81 = arith.mulf %76, %80 : vector<32x32xf32>
    %cst_26 = arith.constant dense<0.000000e+00> : vector<32x32xf32>
    %82 = tpu.matmul %81, %66, %cst_26 {dimension_numbers = #tpu.dot_dimension_numbers<[1], [0], [0], [1], [0, 0, 1, 1], [], []>} : vector<32x32xf32>, vector<32x32xf32>, vector<32x32xf32> -> vector<32x32xf32>
    %83 = tpu.concatenate %24, %43, %62, %81 in 1 : vector<32x32xf32>, vector<32x32xf32>, vector<32x32xf32>, vector<32x32xf32> -> vector<32x128xf32>
    %c0_27 = arith.constant 0 : index
    %c0_28 = arith.constant 0 : index
    %84 = vector.load %arg7[%c0_27, %c0_28] : memref<32x128xf32, #tpu.memory_space<vmem>>, vector<32x128xf32>
    tpu.vector_store %arg7[%c0_27, %c0_28], %83 {strides = array<i32>} : memref<32x128xf32, #tpu.memory_space<vmem>>, vector<32x128xf32>,
    %85 = tpu.concatenate %25, %44, %63, %82 in 1 : vector<32x32xf32>, vector<32x32xf32>, vector<32x32xf32>, vector<32x32xf32> -> vector<32x128xf32>
    %c0_29 = arith.constant 0 : index
    %c0_30 = arith.constant 0 : index
    %86 = vector.load %arg4[%c0_29, %c0_30] : memref<128x128xf32, #tpu.memory_space<vmem>>, vector<128x128xf32>
    %cst_31 = arith.constant dense<0.000000e+00> : vector<32x128xf32>
    %87 = tpu.matmul %85, %86, %cst_31 {dimension_numbers = #tpu.dot_dimension_numbers<[1], [0], [0], [1], [0, 0, 1, 1], [], []>} : vector<32x128xf32>, vector<128x128xf32>, vector<32x128xf32> -> vector<32x128xf32>
    %c0_32 = arith.constant 0 : index
    %c0_33 = arith.constant 0 : index
    %88 = vector.load %arg5[%c0_32, %c0_33] : memref<1x128xf32, #tpu.memory_space<vmem>>, vector<1x128xf32>
    %89 = vector.broadcast %88 : vector<1x128xf32> to vector<32x128xf32>
    %90 = arith.addf %87, %89 : vector<32x128xf32>
    %91 = arith.addf %90, %0 : vector<32x128xf32>
    %cst_34 = arith.constant dense<0.000000e+00> : vector<32xf32>
    %92 = vector.multi_reduction <add>, %91, %cst_34 [1] : vector<32x128xf32> to vector<32xf32>
    %93 = vector.shape_cast %92 : vector<32xf32> to vector<32x1xf32>
    %cst_35 = arith.constant 1.280000e+02 : f32
    %94 = vector.broadcast %cst_35 : f32 to vector<32x1xf32>
    %95 = arith.divf %93, %94 : vector<32x1xf32>
    %96 = vector.broadcast %95 : vector<32x1xf32> to vector<32x128xf32>
    %97 = arith.subf %91, %96 : vector<32x128xf32>
    %98 = arith.mulf %97, %97 : vector<32x128xf32>
    %cst_36 = arith.constant dense<0.000000e+00> : vector<32xf32>
    %99 = vector.multi_reduction <add>, %98, %cst_36 [1] : vector<32x128xf32> to vector<32xf32>
    %100 = vector.shape_cast %99 : vector<32xf32> to vector<32x1xf32>
    %cst_37 = arith.constant 1.280000e+02 : f32
    %101 = vector.broadcast %cst_37 : f32 to vector<32x1xf32>
    %102 = arith.divf %100, %101 : vector<32x1xf32>
    %103 = vector.broadcast %95 : vector<32x1xf32> to vector<32x128xf32>
    %104 = arith.subf %91, %103 : vector<32x128xf32>
    %cst_38 = arith.constant 9.99999974E-6 : f32
    %105 = vector.broadcast %cst_38 : f32 to vector<32x1xf32>
    %106 = arith.addf %102, %105 : vector<32x1xf32>
    %107 = math.rsqrt %106 : vector<32x1xf32>
    %108 = vector.broadcast %107 : vector<32x1xf32> to vector<32x128xf32>
    %109 = arith.mulf %104, %108 : vector<32x128xf32>
    %c0_39 = arith.constant 0 : index
    %c0_40 = arith.constant 0 : index
    %110 = vector.load %arg6[%c0_39, %c0_40] : memref<32x128xf32, #tpu.memory_space<vmem>>, vector<32x128xf32>
    tpu.vector_store %arg6[%c0_39, %c0_40], %109 {strides = array<i32>} : memref<32x128xf32, #tpu.memory_space<vmem>>, vector<32x128xf32>,
    return
  }
}

</mosaic_0001>

<bundles_post_ra>
// kernel: multi_head_attention.1
= control target key start
LH: loop header
LB: loop body
LE: loop exit
PB: predicated region body
PF: predicated region fallthrough
CT: control target
= control target key end

     0   :  { %v2379_v7 = vmov 0.0   ;;  %s3113_s0 = inlined_call_operand.vmem [shape: f32[32,128], index: 0, kind: input, shape index: {}]   ;;  %s3114_s1 = inlined_call_operand.vmem [shape: f32[32,32], index: 1, kind: input, shape index: {}]   ;;  %s3115_s2 = inlined_call_operand.vmem [shape: f32[128,384], index: 2, kind: input, shape index: {}]   ;;  %s3116_s3 = inlined_call_operand.vmem [shape: f32[1,384], index: 3, kind: input, shape index: {}]   ;;  %s3117_s4 = inlined_call_operand.vmem [shape: f32[128,128], index: 4, kind: input, shape index: {}]   ;;  %s3118_s5 = inlined_call_operand.vmem [shape: f32[1,128], index: 5, kind: input, shape index: {}]   ;;  %s3119_s6 = inlined_call_operand.hbm [shape: f32[32,128], index: 6, kind: output, shape index: {0}]   ;;  %s3120_s7 = inlined_call_operand.vmem [shape: f32[32,128], index: 7, kind: output, shape index: {1}]  }
   0x1   :  { %v35_v0 = vld [vmem:[%s3115_s2 + $0x8] sm:$0xff]  ;;  %v38_v1 = vld [vmem:[%s3115_s2 + $0x20] sm:$0xff]  ;;  %v37_v4 = vld [vmem:[%s3115_s2 + $0x18] sm:$0xff]  ;;  %163 = vmatprep.mubr.f32.mxu0 %v2379_v7 }
   0x2   :  { %v34_v2 = vld [vmem:[%s3115_s2] sm:$0xff]  ;;  %v2006_v3 = vpack.c.bf16 %v38_v1, %v35_v0  ;;  %v41_v5 = vld [vmem:[%s3115_s2 + $0x38] sm:$0xff]  ;;  %v44_v6 = vld [vmem:[%s3115_s2 + $0x50] sm:$0xff] }
   0x3   :  { %v2008_v8 = vpack.c.bf16 %v37_v4, %v34_v2  ;;  %v2010_v9 = vpack.c.bf16 %v44_v6, %v41_v5  ;;  %v40_v10 = vld [vmem:[%s3115_s2 + $0x30] sm:$0xff]  ;;  %v43_v11 = vld [vmem:[%s3115_s2 + $0x48] sm:$0xff]  ;;  %v50_v13 = vld [vmem:[%s3115_s2 + $0x80] sm:$0xff] }
   0x4   :  { %v47_v12 = vld [vmem:[%s3115_s2 + $0x68] sm:$0xff]  ;;  %2007 = vmatprep.subr.bf16.mxu0 %v2006_v3  ;;  %v2012_v14 = vpack.c.bf16 %v43_v11, %v40_v10  ;;  %v46_v16 = vld [vmem:[%s3115_s2 + $0x60] sm:$0xff]  ;;  %v49_v17 = vld [vmem:[%s3115_s2 + $0x78] sm:$0xff] }
   0x5   :  { %2009 = vmatpush1.bf16.msra.mxu0 %v2008_v8  ;;  %v2014_v15 = vpack.c.bf16 %v50_v13, %v47_v12  ;;  %v53_v18 = vld [vmem:[%s3115_s2 + $0x98] sm:$0xff]  ;;  %v56_v19 = vld [vmem:[%s3115_s2 + $0xb0] sm:$0xff]  ;;  %v2016_v20 = vpack.c.bf16 %v49_v17, %v46_v16  ;;  %v55_v23 = vld [vmem:[%s3115_s2 + $0xa8] sm:$0xff] }
   0x6   :  { %2011 = vmatprep.subr.bf16.mxu0 %v2010_v9  ;;  %v2018_v21 = vpack.c.bf16 %v56_v19, %v53_v18  ;;  %v52_v22 = vld [vmem:[%s3115_s2 + $0x90] sm:$0xff]  ;;  %v59_v24 = vld [vmem:[%s3115_s2 + $0xc8] sm:$0xff]  ;;  %v62_v25 = vld [vmem:[%s3115_s2 + $0xe0] sm:$0xff] }
   0x7   :  { %v26_v26 = vld [vmem:[%s3113_s0] sm:$0xff]  ;;  %v2020_v27 = vpack.c.bf16 %v55_v23, %v52_v22 }
   0x8   :  { %1850 = vmatprep.mubr.f32.mxu1 %v26_v26 }
   0x9   :  { %2013 = vmatpush1.bf16.msra.mxu0 %v2012_v14 }
   0xa   :  { %2015 = vmatprep.subr.bf16.mxu0 %v2014_v15 }
   0xd   :  { %2017 = vmatpush1.bf16.msra.mxu0 %v2016_v20 }
   0xe   :  { %13 = vsyncpa [#allocation3], 0  ;;  %2019 = vmatprep.subr.bf16.mxu0 %v2018_v21  ;;  %v2022_v28 = vpack.c.bf16 %v62_v25, %v59_v24  ;;  %v58_v29 = vld [vmem:[%s3115_s2 + $0xc0] sm:$0xff]  ;;  %v61_v30 = vld [vmem:[%s3115_s2 + $0xd8] sm:$0xff]  ;;  %v84_v53 = vlaneseq  ;;  %vm273_vm0 = vcmask 261120   ;;  %s2381_s20 = smov 64  }
   0xf   :  { %v65_v31 = vld [vmem:[%s3115_s2 + $0xf8] sm:$0xff]  ;;  %v68_v32 = vld [vmem:[%s3115_s2 + $0x110] sm:$0xff]  ;;  %v2024_v33 = vpack.c.bf16 %v61_v30, %v58_v29  ;;  %v67_v36 = vld [vmem:[%s3115_s2 + $0x108] sm:$0xff]  ;;  %s2382_s21 = smov 32   ;;  %vm1410_vm2 = vcmask 523264   ;;  %vm1415_vm3 = vcmask 785408  }
  0x10   :  { %v2026_v34 = vpack.c.bf16 %v68_v32, %v65_v31  ;;  %v64_v35 = vld [vmem:[%s3115_s2 + $0xf0] sm:$0xff]  ;;  %v71_v37 = vld [vmem:[%s3115_s2 + $0x128] sm:$0xff]  ;;  %v74_v38 = vld [vmem:[%s3115_s2 + $0x140] sm:$0xff]  ;;  %v2547_v54 = vshrl.u32 %v84_v53, 7  ;;  %s2383_s18 = smov [#allocation2]  }
  0x11   :  { %2021 = vmatpush1.bf16.msra.mxu0 %v2020_v27  ;;  %v2028_v39 = vpack.c.bf16 %v67_v36, %v64_v35  ;;  %v2030_v40 = vpack.c.bf16 %v74_v38, %v71_v37  ;;  %v70_v41 = vld [vmem:[%s3115_s2 + $0x120] sm:$0xff]  ;;  %v73_v42 = vld [vmem:[%s3115_s2 + $0x138] sm:$0xff]  ;;  %v80_v44 = vld [vmem:[%s3115_s2 + $0x170] sm:$0xff]  ;;  %s1650_s19 = sshll.u32 %s2383_s18, 4  ;;  %s1651_s19 = int_to_ptr.vmem [resolvable:$true] %s1650_s19 }
  0x12   :  { %2023 = vmatprep.subr.bf16.mxu0 %v2022_v28  ;;  %v77_v43 = vld [vmem:[%s3115_s2 + $0x158] sm:$0xff]  ;;  %v2032_v45 = vpack.c.bf16 %v73_v42, %v70_v41  ;;  %v76_v47 = vld [vmem:[%s3115_s2 + $0x150] sm:$0xff]  ;;  %v79_v48 = vld [vmem:[%s3115_s2 + $0x168] sm:$0xff]  ;;  %v86_v55 = vsub.s32 0, %v2547_v54  ;;  %v90_v58 = vsub.s32 1, %v2547_v54  ;;  %s2355_s22 = scalar_lea.vmem %s1651_s19, 512  ;;  %p2360_p1 = scmp.lt.s32.totalorder %s1651_s19, %s1651_s19 }
  0x13   :  { %v2034_v46 = vpack.c.bf16 %v80_v44, %v77_v43  ;;  %v2036_v49 = vpack.c.bf16 %v79_v48, %v76_v47  ;;  %v2530_v50 = vld [vmem:[%s3113_s0 + $0x8] sm:$0xff]  ;;  %v2537_v51 = vld [vmem:[%s3113_s0 + $0x10] sm:$0xff]  ;;  %v2544_v52 = vld [vmem:[%s3113_s0 + $0x18] sm:$0xff]  ;;  %p2356_p0 = scmp.ne.s32.totalorder %s1651_s19, %s2355_s22  ;;  %p2361_p2 = scmp.lt.s32.totalorder %s2355_s22, %s2355_s22 }
  0x14   :  { %v2553_v56 = vld [vmem:[%s3116_s3] sm:$0x7]  ;;  %vm2564_vm1 = vmpackc.low %vm273_vm0, %vm273_vm0  ;;  %v36_v17 = vld [vmem:[%s3115_s2 + $0x10] sm:$0xff] }
  0x15   :  { %2025 = vmatpush1.bf16.msra.mxu0 %v2024_v33  ;;  %v87_v57 = vrot.slane %v2553_v56, %v86_v55  ;;  %v91_v62 = vrot.slane %v2553_v56, %v90_v58  ;;  %v39_v18 = vld [vmem:[%s3115_s2 + $0x28] sm:$0xff]  ;;  %v42_v19 = vld [vmem:[%s3115_s2 + $0x40] sm:$0xff]  ;;  %v45_v21 = vld [vmem:[%s3115_s2 + $0x58] sm:$0xff]  ;;  %p2362_p3 = por %p2361_p2, %p2360_p1 }
  0x16   :  { %2027 = vmatprep.subr.bf16.mxu0 %v2026_v34  ;;  %v2038_v20 = vpack.c.bf16 %v39_v18, %v36_v17  ;;  %v2042_v22 = vpack.c.bf16 %v45_v21, %v42_v19  ;;  %v48_v23 = vld [vmem:[%s3115_s2 + $0x70] sm:$0xff]  ;;  %v51_v24 = vld [vmem:[%s3115_s2 + $0x88] sm:$0xff]  ;;  %v57_v27 = vld [vmem:[%s3115_s2 + $0xb8] sm:$0xff] }
  0x17   :  { %v2046_v25 = vpack.c.bf16 %v51_v24, %v48_v23  ;;  %v60_v29 = vld [vmem:[%s3115_s2 + $0xd0] sm:$0xff]  ;;  %v63_v30 = vld [vmem:[%s3115_s2 + $0xe8] sm:$0xff]  ;;  %v66_v32 = vld [vmem:[%s3115_s2 + $0x100] sm:$0xff]  ;;  %v94_v24 = vsub.s32 2, %v2547_v54  ;;  %p2363_p4 = pnand %p2362_p3, %p2356_p0 }
  0x18   :  { %2039 = vmatprep.subr.bf16.mxu1 %v2038_v20  ;;  %v2054_v31 = vpack.c.bf16 %v63_v30, %v60_v29  ;;  %v69_v33 = vld [vmem:[%s3115_s2 + $0x118] sm:$0xff]  ;;  %v72_v35 = vld [vmem:[%s3115_s2 + $0x130] sm:$0xff]  ;;  %v75_v36 = vld [vmem:[%s3115_s2 + $0x148] sm:$0xff] }
  0x19   :  { %2029 = vmatpush1.bf16.msra.mxu0 %v2028_v39  ;;  %2041 = vmatpush3.bf16.msra.mxu1 %v2038_v20  ;;  %v2058_v34 = vpack.c.bf16 %v69_v33, %v66_v32  ;;  %v2062_v37 = vpack.c.bf16 %v75_v36, %v72_v35  ;;  %v78_v38 = vld [vmem:[%s3115_s2 + $0x160] sm:$0xff]  ;;  %v81_v39 = vld [vmem:[%s3115_s2 + $0x178] sm:$0xff]  ;;  %v95_v29 = vrot.slane %v2553_v56, %v94_v24 }
  0x1a   :  { %2031 = vmatprep.subr.bf16.mxu0 %v2030_v40  ;;  %2043 = vmatprep.subr.bf16.mxu1 %v2042_v22  ;;  %v2066_v40 = vpack.c.bf16 %v81_v39, %v78_v38  ;;  %v2646_v43 = vld [vmem:[%s3114_s1] sm:$0xff] }
  0x1d   :  { %2033 = vmatpush1.bf16.msra.mxu0 %v2032_v45  ;;  %2045 = vmatpush3.bf16.msra.mxu1 %v2042_v22 }
  0x1e   :  { %2035 = vmatprep.subr.bf16.mxu0 %v2034_v46  ;;  %2047 = vmatprep.subr.bf16.mxu1 %v2046_v25  ;;  %v2651_v46 = vld [vmem:[%s3114_s1 + $0x8] sm:$0xff] }
  0x21   :  { %2037 = vmatpush1.bf16.msra.mxu0 %v2036_v49  ;;  %2049 = vmatpush3.bf16.msra.mxu1 %v2046_v25 }
  0x24   :  { %164 = vmatmul.mubr.f32.vlgmr.msra.gmra.mrb[0].mxu0 %v26_v26  ;;  %v54_v26 = vld [vmem:[%s3115_s2 + $0xa0] sm:$0xff] }
  0x25   :  { %169 = vmatprep.mubr.f32.mxu0 %v2379_v7  ;;  %v2050_v28 = vpack.c.bf16 %v57_v27, %v54_v26 }
  0x27   :  { %2051 = vmatprep.subr.bf16.mxu1 %v2050_v28 }
  0x28   :  { %170 = vmatmul.mubr.f32.gmra.mrb[2].mxu0 %v2530_v50  ;;  %2053 = vmatpush3.bf16.msra.mxu1 %v2050_v28 }
  0x29   :  { %175 = vmatprep.mubr.f32.mxu0 %v2379_v7  ;;  %2055 = vmatprep.subr.bf16.mxu1 %v2054_v31 }
  0x2c   :  { %176 = vmatmul.mubr.f32.gmra.mrb[4].mxu0 %v2537_v51  ;;  %2057 = vmatpush3.bf16.msra.mxu1 %v2054_v31 }
  0x2d   :  { %181 = vmatprep.mubr.f32.mxu0 %v2379_v7  ;;  %2059 = vmatprep.subr.bf16.mxu1 %v2058_v34 }
  0x30   :  { %182 = vmatmul.mubr.f32.gmra.mrb[6].mxu0 %v2544_v52  ;;  %2061 = vmatpush3.bf16.msra.mxu1 %v2058_v34 }
  0x31   :  { %2063 = vmatprep.subr.bf16.mxu1 %v2062_v37 }
  0x34   :  { %2065 = vmatpush3.bf16.msra.mxu1 %v2062_v37 }
  0x35   :  { %2067 = vmatprep.subr.bf16.mxu1 %v2066_v40 }
  0x38   :  { %2069 = vmatpush3.bf16.msra.mxu1 %v2066_v40 }
  0x3b   :  { %1851 = vmatmul.mubr.f32.vlgmr.msra.gmra.mrb[0].mxu1 %v2530_v50  ;;  %v2657_v50 = vld [vmem:[%s3114_s1 + $0x10] sm:$0xff] }
  0x3c   :  { %1853 = vmatprep.mubr.f32.mxu1 %v2537_v51 }
  0x3f   :  { %1854 = vmatmul.mubr.f32.gmra.mrb[2].mxu1 %v2544_v52 }
  0xf7   :  { %v165_v59 = vpop.f32.mrb[0].mxu0 }
  0xf8   :  { %v2557_v60 = vadd.f32 %v165_v59, %v87_v57  ;;  %v167_v61 = vpop.f32.mrb[1].mxu0 }
  0xf9   :  { %v168_v1 = vadd.f32 %v167_v61, %v91_v62 }
  0xfa   :  { %1864 = vmatprep.mubr.msk.f32.mxu0 %vm273_vm0, %v2557_v60 }
  0xfb   :  { %v171_v63 = vpop.f32.mrb[2].mxu0 }
  0xfc   :  { %v173_v0 = vpop.f32.mrb[3].mxu0  ;;  %v2580_v14 = vadd.f32 %v171_v63, %v87_v57 }
  0xfd   :  { %v174_v2 = vadd.f32 %v173_v0, %v91_v62 }
  0xff   :  { %v177_v4 = vpop.f32.mrb[4].mxu0  ;;  %v2070_v5 = vpack.c.bf16 %v174_v2, %v168_v1  ;;  %v2568_v6 = vpack.i.bf16 %v174_v2, %v168_v1 }
 0x100   :  { %v179_v7 = vpop.f32.mrb[5].mxu0  ;;  %v2582_v15 = vadd.f32 %v177_v4, %v87_v57 }
 0x101   :  { %2072 = vmatprep.subr.msk.bf16.mxu0 %vm2564_vm1, %v2070_v5  ;;  %v180_v10 = vadd.f32 %v179_v7, %v91_v62 }
 0x102   :  { %2075 = vmatpush3.bf16.xpose.msk.msra.mxu0 %vm2564_vm1, %v2070_v5 }
 0x103   :  { %v183_v8 = vpop.f32.mrb[6].mxu0 }
 0x104   :  { %v185_v9 = vpop.f32.mrb[7].mxu0  ;;  %v2588_v16 = vadd.f32 %v183_v8, %v87_v57  ;;  %v2664_v57 = vld [vmem:[%s3114_s1 + $0x18] sm:$0xff]  ;;  %s2380_s1 = smov 96  }
 0x105   :  { %v186_v11 = vadd.f32 %v185_v9, %v91_v62 }
 0x107   :  { %v2076_v12 = vpack.c.bf16 %v186_v11, %v180_v10  ;;  %v2574_v13 = vpack.i.bf16 %v186_v11, %v180_v10 }
 0x109   :  { %2078 = vmatprep.subr.msk.bf16.mxu0 %vm2564_vm1, %v2076_v12 }
 0x10a   :  { %2081 = vmatpush3.bf16.xpose.msk.msra.mxu0 %vm2564_vm1, %v2076_v12 }
 0x10e   :  { %v1852_v0 = vpop.f32.mrb[0].mxu1 }
 0x10f   :  { %v254_v1 = vpop.f32.mrb[1].mxu1  ;;  %v260_v31 = vadd.f32 %v1852_v0, %v95_v29 }
 0x110   :  { %v255_v32 = vadd.f32 %v254_v1, %v95_v29 }
 0x111   :  { %1865 = vmatmul.mubr.msk.f32.vlgmr.msra.gmra.mrb[8].mxu0 %vm273_vm0, %v2580_v14 }
 0x112   :  { %1867 = vmatprep.mubr.msk.f32.mxu0 %vm273_vm0, %v2582_v15  ;;  %v1855_v2 = vpop.f32.mrb[2].mxu1  ;;  %v2082_v35 = vpack.c.bf16 %v260_v31, %v255_v32  ;;  %v2677_v54 = vpack.i.bf16 %v260_v31, %v255_v32 }
 0x113   :  { %v270_v33 = vadd.f32 %v1855_v2, %v95_v29  ;;  %v264_v34 = vpop.f32.mrb[3].mxu1 }
 0x114   :  { %v265_v36 = vadd.f32 %v264_v34, %v95_v29  ;;  %2083 = vmatprep.subr.bf16.mxu1 %v2082_v35 }
 0x115   :  { %1868 = vmatmul.mubr.msk.f32.gmra.mrb[10].mxu0 %vm273_vm0, %v2588_v16  ;;  %2085 = vmatpush3.bf16.msra.mxu1 %v2082_v35 }
 0x116   :  { %v2086_v37 = vpack.c.bf16 %v270_v33, %v265_v36  ;;  %v2679_v38 = vpack.i.bf16 %v270_v33, %v265_v36 }
 0x118   :  { %2087 = vmatprep.subr.bf16.mxu1 %v2086_v37 }
 0x119   :  { %2089 = vmatpush3.bf16.msra.mxu1 %v2086_v37 }
 0x1e4   :  { %v1866_v41 = vpop.f32.mrb[8].mxu0 }
 0x1e5   :  { %v364_v42 = vpop.f32.mrb[9].mxu0  ;;  %v384_v44 = vmul.f32 0.17677669, %v1866_v41 }
 0x1e6   :  { %v383_v45 = vmul.f32 0.17677669, %v364_v42 }
 0x1e7   :  { %v388_v55 = vadd.f32 %v384_v44, %v2651_v46 }
 0x1e8   :  { %v1869_v47 = vpop.f32.mrb[10].mxu0  ;;  %v387_v48 = vadd.f32 %v383_v45, %v2646_v43 }
 0x1e9   :  { %v374_v49 = vpop.f32.mrb[11].mxu0  ;;  %v386_v51 = vmul.f32 0.17677669, %v1869_v47  ;;  %v394_v59 = vsel %vm273_vm0, %v388_v55, -inf }
 0x1ea   :  { %v385_v52 = vmul.f32 0.17677669, %v374_v49  ;;  %v391_v53 = vsel %vm273_vm0, %v387_v48, -inf }
 0x1eb   :  { %392 = vmax.xlane.f32.xlu0 %v391_v53  ;;  %v390_v62 = vadd.f32 %v386_v51, %v2664_v57 }
 0x1ec   :  { %v389_v58 = vadd.f32 %v385_v52, %v2657_v50 }
 0x1ed   :  { %v400_v63 = vsel %vm273_vm0, %v390_v62, -inf }
 0x1ee   :  { %v397_v61 = vsel %vm273_vm0, %v389_v58, -inf }
 0x1ef   :  { %395 = vmax.xlane.f32.xlu0 %v394_v59  ;;  %398 = vmax.xlane.f32.xlu1 %v397_v61 }
 0x1f3   :  { %401 = vmax.xlane.f32.xlu1 %v400_v63 }
 0x278   :  { %v393_v4 = vpop.xlane.xlu0 %392 }
 0x279   :  { %v403_v5 = vsub.f32 %v387_v48, %v393_v4 }
 0x27b   :  { %v407_v7 = vmul.f32 1.442695, %v403_v5 }
 0x27c   :  { %v396_v8 = vpop.xlane.xlu0 %395  ;;  %v399_v9 = vpop.xlane.xlu1 %398 }
 0x27d   :  { %2279 = vpow2.f32 %v407_v7  ;;  %v404_v10 = vsub.f32 %v388_v55, %v396_v8  ;;  %v405_v11 = vsub.f32 %v389_v58, %v399_v9 }
 0x27f   :  { %v409_v12 = vmul.f32 1.442695, %v404_v10  ;;  %v411_v17 = vmul.f32 1.442695, %v405_v11 }
 0x280   :  { %v402_v18 = vpop.xlane.xlu1 %401 }
 0x281   :  { %2281 = vpow2.f32 %v409_v12  ;;  %v406_v19 = vsub.f32 %v390_v62, %v402_v18 }
 0x282   :  { %2283 = vpow2.f32 %v411_v17 }
 0x283   :  { %v413_v20 = vmul.f32 1.442695, %v406_v19 }
 0x285   :  { %2285 = vpow2.f32 %v413_v20 }
 0x287   :  { %v2280_v21 = vpop.eup %2279 }
 0x288   :  { %v415_v22 = vsel %vm273_vm0, %v2280_v21, 0.0 }
 0x289   :  { %416 = vadd.xlane.f32.xlu0 %v415_v22 }
 0x28b   :  { %v2282_v23 = vpop.eup %2281 }
 0x28c   :  { %v2284_v25 = vpop.eup %2283  ;;  %v418_v26 = vsel %vm273_vm0, %v2282_v23, 0.0 }
 0x28d   :  { %419 = vadd.xlane.f32.xlu1 %v418_v26  ;;  %v421_v27 = vsel %vm273_vm0, %v2284_v25, 0.0 }
 0x28e   :  { %422 = vadd.xlane.f32.xlu0 %v421_v27 }
 0x28f   :  { %v2286_v28 = vpop.eup %2285 }
 0x290   :  { %v424_v30 = vsel %vm273_vm0, %v2286_v28, 0.0 }
 0x291   :  { %425 = vadd.xlane.f32.xlu1 %v424_v30 }
 0x2a2   :  { %2195 = vrot.lane.b32.xlu1 %v2574_v13, %s2380_s1 }
 0x2a4   :  { %2190 = vrot.lane.b32.xlu0 %v2568_v6, %s2380_s1 }
 0x2a6   :  { %2200 = vrot.lane.b32.xlu1 %v2568_v6, %s2381_s20 }
 0x2a8   :  { %534 = vrot.lane.b32.xlu0 %v2580_v14, %s2380_s1 }
 0x2aa   :  { %532 = vrot.lane.b32.xlu1 %v2557_v60, %s2380_s1 }
 0x2ac   :  { %536 = vrot.lane.b32.xlu0 %v2582_v15, %s2380_s1 }
 0x2ae   :  { %2205 = vrot.lane.b32.xlu1 %v2574_v13, %s2381_s20 }
 0x2b0   :  { %814 = vrot.lane.b32.xlu0 %v2557_v60, %s2381_s20 }
 0x2b2   :  { %538 = vrot.lane.b32.xlu1 %v2588_v16, %s2380_s1 }
 0x2b4   :  { %818 = vrot.lane.b32.xlu0 %v2582_v15, %s2381_s20 }
 0x2b6   :  { %816 = vrot.lane.b32.xlu1 %v2580_v14, %s2381_s20 }
 0x2ba   :  { %820 = vrot.lane.b32.xlu1 %v2588_v16, %s2381_s20 }
 0x316   :  { %v417_v56 = vpop.xlane.xlu0 %416 }
 0x317   :  { %2287 = vrcp.f32 %v417_v56 }
 0x31a   :  { %v420_v39 = vpop.xlane.xlu1 %419 }
 0x31b   :  { %v423_v40 = vpop.xlane.xlu0 %422  ;;  %2289 = vrcp.f32 %v420_v39 }
 0x31c   :  { %2291 = vrcp.f32 %v423_v40 }
 0x31e   :  { %v426_v41 = vpop.xlane.xlu1 %425 }
 0x31f   :  { %v2191_v42 = vpop.permute.xlu0 %2190  ;;  %2293 = vrcp.f32 %v426_v41 }
 0x320   :  { %v2193_v44 = vunpack.i.h.bf16 %v2191_v42  ;;  %v2192_v45 = vunpack.i.l.bf16 %v2191_v42 }
 0x321   :  { %v2288_v47 = vpop.eup %2287 }
 0x322   :  { %v2090_v48 = vpack.c.bf16 %v2193_v44, %v2192_v45  ;;  %v2196_v49 = vpop.permute.xlu1 %2195  ;;  %v2705_v51 = vmul.f32 %v2288_v47, %v2280_v21 }
 0x323   :  { %v2198_v52 = vunpack.i.h.bf16 %v2196_v49  ;;  %v2197_v53 = vunpack.i.l.bf16 %v2196_v49  ;;  %v535_v7 = vpop.permute.xlu0 %534 }
 0x324   :  { %2092 = vmatprep.subr.msk.bf16.mxu1 %vm2564_vm1, %v2090_v48  ;;  %1878 = vmatprep.mubr.msk.f32.mxu1 %vm273_vm0, %v2705_v51 }
 0x325   :  { %v2290_v55 = vpop.eup %2289  ;;  %v2096_v63 = vpack.c.bf16 %v2198_v52, %v2197_v53 }
 0x326   :  { %v2292_v58 = vpop.eup %2291  ;;  %v2711_v59 = vmul.f32 %v2290_v55, %v2282_v23  ;;  %v2201_v61 = vpop.permute.xlu1 %2200 }
 0x327   :  { %v2713_v62 = vmul.f32 %v2292_v58, %v2284_v25  ;;  %v2203_v4 = vunpack.i.h.bf16 %v2201_v61  ;;  %v2202_v5 = vunpack.i.l.bf16 %v2201_v61  ;;  %v537_v12 = vpop.permute.xlu0 %536 }
 0x328   :  { %1879 = vmatmul.mubr.msk.f32.vlgmr.msra.gmra.mrb[4].mxu1 %vm273_vm0, %v2711_v59 }
 0x329   :  { %v2294_v0 = vpop.eup %2293  ;;  %2095 = vmatpush3.bf16.xpose.msk.msra.mxu1 %vm2564_vm1, %v2090_v48  ;;  %1881 = vmatprep.mubr.msk.f32.mxu1 %vm273_vm0, %v2713_v62  ;;  %v2110_v8 = vpack.c.bf16 %v2203_v4, %v2202_v5 }
 0x32a   :  { %2098 = vmatprep.subr.msk.bf16.mxu1 %vm2564_vm1, %v2096_v63  ;;  %v2723_v1 = vmul.f32 %v2294_v0, %v2286_v28  ;;  %v533_v2 = vpop.permute.xlu1 %532 }
 0x32b   :  { %v815_v19 = vpop.permute.xlu0 %814 }
 0x32c   :  { %1882 = vmatmul.mubr.msk.f32.gmra.mrb[6].mxu1 %vm273_vm0, %v2723_v1 }
 0x32d   :  { %1892 = vmatprep.mubr.msk.f32.mxu1 %vm273_vm0, %v533_v2 }
 0x32e   :  { %v2206_v9 = vpop.permute.xlu1 %2205 }
 0x32f   :  { %v2208_v10 = vunpack.i.h.bf16 %v2206_v9  ;;  %v2207_v11 = vunpack.i.l.bf16 %v2206_v9  ;;  %v819_v21 = vpop.permute.xlu0 %818 }
 0x331   :  { %2101 = vmatpush3.bf16.xpose.msk.msra.mxu1 %vm2564_vm1, %v2096_v63  ;;  %v2116_v17 = vpack.c.bf16 %v2208_v10, %v2207_v11 }
 0x332   :  { %2112 = vmatprep.subr.msk.bf16.mxu1 %vm2564_vm1, %v2110_v8  ;;  %v539_v18 = vpop.permute.xlu1 %538 }
 0x336   :  { %v817_v20 = vpop.permute.xlu1 %816 }
 0x338   :  { %1893 = vmatmul.mubr.msk.f32.vlgmr.msra.gmra.mrb[8].mxu1 %vm273_vm0, %v535_v7 }
 0x339   :  { %1895 = vmatprep.mubr.msk.f32.mxu1 %vm273_vm0, %v537_v12  ;;  %2115 = vmatpush3.bf16.xpose.msk.msra.mxu1 %vm2564_vm1, %v2110_v8 }
 0x33a   :  { %2118 = vmatprep.subr.msk.bf16.mxu1 %vm2564_vm1, %v2116_v17  ;;  %v821_v22 = vpop.permute.xlu1 %820 }
 0x33c   :  { %1896 = vmatmul.mubr.msk.f32.gmra.mrb[10].mxu1 %vm273_vm0, %v539_v18 }
 0x33d   :  { %1920 = vmatprep.mubr.msk.f32.mxu1 %vm273_vm0, %v815_v19 }
 0x341   :  { %2121 = vmatpush3.bf16.xpose.msk.msra.mxu1 %vm2564_vm1, %v2116_v17 }
 0x348   :  { %1921 = vmatmul.mubr.msk.f32.vlgmr.msra.gmra.mrb[12].mxu1 %vm273_vm0, %v817_v20 }
 0x349   :  { %1923 = vmatprep.mubr.msk.f32.mxu1 %vm273_vm0, %v819_v21 }
 0x34c   :  { %1924 = vmatmul.mubr.msk.f32.gmra.mrb[14].mxu1 %vm273_vm0, %v821_v22 }
 0x3fb   :  { %v2745_v23 = vpop.f32.mrb[4].mxu1 }
 0x3fc   :  { %v2747_v24 = vpop.f32.mrb[5].mxu1 }
 0x3ff   :  { %v2749_v25 = vpop.f32.mrb[6].mxu1 }
 0x400   :  { %v2751_v26 = vpop.f32.mrb[7].mxu1 }
 0x40b   :  { %v2753_v27 = vpop.f32.mrb[8].mxu1 }
 0x40c   :  { %v630_v28 = vpop.f32.mrb[9].mxu1  ;;  %v650_v21 = vmul.f32 0.17677669, %v2753_v27 }
 0x40f   :  { %v1897_v29 = vpop.f32.mrb[10].mxu1 }
 0x410   :  { %v640_v30 = vpop.f32.mrb[11].mxu1  ;;  %v652_v22 = vmul.f32 0.17677669, %v1897_v29 }
 0x411   :  { %v651_v19 = vmul.f32 0.17677669, %v640_v30 }
 0x41b   :  { %v1922_v31 = vpop.f32.mrb[12].mxu1 }
 0x41c   :  { %v932_v32 = vmul.f32 0.17677669, %v1922_v31  ;;  %v912_v33 = vpop.f32.mrb[13].mxu1  ;;  %v2802_v31 = vadd.f32 %v651_v19, %v2657_v50 }
 0x41d   :  { %v931_v34 = vmul.f32 0.17677669, %v912_v33 }
 0x41e   :  { %v936_v35 = vadd.f32 %v932_v32, %v2651_v46 }
 0x41f   :  { %v1925_v36 = vpop.f32.mrb[14].mxu1  ;;  %v935_v37 = vadd.f32 %v931_v34, %v2646_v43 }
 0x420   :  { %v922_v56 = vpop.f32.mrb[15].mxu1  ;;  %v942_v39 = vsel %vm273_vm0, %v936_v35, -inf  ;;  %v934_v40 = vmul.f32 0.17677669, %v1925_v36 }
 0x421   :  { %v933_v41 = vmul.f32 0.17677669, %v922_v56  ;;  %943 = vmax.xlane.f32.xlu1 %v942_v39  ;;  %v939_v42 = vsel %vm273_vm0, %v935_v37, -inf }
 0x422   :  { %940 = vmax.xlane.f32.xlu0 %v939_v42  ;;  %v938_v47 = vadd.f32 %v934_v40, %v2664_v57 }
 0x423   :  { %v937_v44 = vadd.f32 %v933_v41, %v2657_v50 }
 0x424   :  { %v948_v48 = vsel %vm273_vm0, %v938_v47, -inf }
 0x425   :  { %v945_v45 = vsel %vm273_vm0, %v937_v44, -inf }
 0x426   :  { %946 = vmax.xlane.f32.xlu0 %v945_v45 }
 0x42a   :  { %949 = vmax.xlane.f32.xlu0 %v948_v48 }
 0x4ae   :  { %v944_v49 = vpop.xlane.xlu1 %943 }
 0x4af   :  { %v952_v52 = vsub.f32 %v936_v35, %v944_v49  ;;  %v941_v53 = vpop.xlane.xlu0 %940 }
 0x4b0   :  { %v951_v55 = vsub.f32 %v935_v37, %v941_v53 }
 0x4b1   :  { %v957_v58 = vmul.f32 1.442695, %v952_v52 }
 0x4b2   :  { %v955_v61 = vmul.f32 1.442695, %v951_v55 }
 0x4b3   :  { %2295 = vpow2.f32 %v957_v58  ;;  %v947_v5 = vpop.xlane.xlu0 %946 }
 0x4b4   :  { %2297 = vpow2.f32 %v955_v61  ;;  %v953_v7 = vsub.f32 %v937_v44, %v947_v5 }
 0x4b6   :  { %v959_v8 = vmul.f32 1.442695, %v953_v7 }
 0x4b7   :  { %v950_v9 = vpop.xlane.xlu0 %949 }
 0x4b8   :  { %v954_v10 = vsub.f32 %v938_v47, %v950_v9  ;;  %2299 = vpow2.f32 %v959_v8 }
 0x4ba   :  { %v961_v11 = vmul.f32 1.442695, %v954_v10 }
 0x4bc   :  { %2301 = vpow2.f32 %v961_v11 }
 0x4bd   :  { %v2763_v63 = vpop.eup %2295 }
 0x4be   :  { %v2765_v0 = vpop.eup %2297  ;;  %v966_v2 = vsel %vm273_vm0, %v2763_v63, 0.0 }
 0x4bf   :  { %967 = vadd.xlane.f32.xlu1 %v966_v2  ;;  %v963_v4 = vsel %vm273_vm0, %v2765_v0, 0.0 }
 0x4c0   :  { %964 = vadd.xlane.f32.xlu0 %v963_v4 }
 0x4c2   :  { %v2779_v12 = vpop.eup %2299 }
 0x4c3   :  { %v969_v17 = vsel %vm273_vm0, %v2779_v12, 0.0 }
 0x4d0   :  { %2215 = vrot.lane.b32.xlu1 %v2679_v38, %s2381_s20 }
 0x4d4   :  { %2220 = vrot.lane.b32.xlu1 %v2568_v6, %s2382_s21  ;;  %v2783_v6 = vpop.eup %2301 }
 0x4d5   :  { %v972_v18 = vsel %vm273_vm0, %v2783_v6, 0.0 }
 0x4d6   :  { %2210 = vrot.lane.b32.xlu0 %v2677_v54, %s2381_s20 }
 0x4d8   :  { %2225 = vrot.lane.b32.xlu1 %v2574_v13, %s2382_s21  ;;  %v649_v13 = vmul.f32 0.17677669, %v630_v28 }
 0x4da   :  { %v2796_v20 = vadd.f32 %v649_v13, %v2646_v43 }
 0x4f5   :  { %970 = vadd.xlane.f32.xlu0 %v969_v17 }
 0x4fc   :  { %973 = vadd.xlane.f32.xlu1 %v972_v18 }
 0x50b   :  { %1092 = vrot.lane.b32.xlu0 %v2557_v60, %s2382_s21  ;;  %v657_v60 = vsel %vm273_vm0, %v2796_v20, -inf }
 0x50d   :  { %1094 = vrot.lane.b32.xlu1 %v2580_v14, %s2382_s21  ;;  %v2805_v14 = vadd.f32 %v650_v21, %v2651_v46 }
 0x50f   :  { %1096 = vrot.lane.b32.xlu0 %v2582_v15, %s2382_s21  ;;  %v663_v15 = vsel %vm273_vm0, %v2802_v31, -inf  ;;  %v660_v27 = vsel %vm273_vm0, %v2805_v14, -inf }
 0x511   :  { %1098 = vrot.lane.b32.xlu1 %v2588_v16, %s2382_s21  ;;  %v2810_v16 = vadd.f32 %v652_v22, %v2664_v57 }
 0x513   :  { %v666_v28 = vsel %vm273_vm0, %v2810_v16, -inf }
 0x52e   :  { %658 = vmax.xlane.f32.xlu0 %v657_v60 }
 0x532   :  { %664 = vmax.xlane.f32.xlu0 %v663_v15 }
 0x535   :  { %661 = vmax.xlane.f32.xlu1 %v660_v27 }
 0x536   :  { %667 = vmax.xlane.f32.xlu0 %v666_v28 }
 0x54c   :  { %v968_v29 = vpop.xlane.xlu1 %967 }
 0x54d   :  { %v965_v30 = vpop.xlane.xlu0 %964 }
 0x54e   :  { %2303 = vrcp.f32 %v965_v30 }
 0x54f   :  { %2305 = vrcp.f32 %v968_v29 }
 0x550   :  { %v2216_v32 = vpop.permute.xlu1 %2215 }
 0x551   :  { %v2211_v33 = vpop.permute.xlu0 %2210  ;;  %v2218_v34 = vunpack.i.h.bf16 %v2216_v32  ;;  %v2217_v35 = vunpack.i.l.bf16 %v2216_v32 }
 0x552   :  { %v2213_v36 = vunpack.i.h.bf16 %v2211_v33  ;;  %v2212_v37 = vunpack.i.l.bf16 %v2211_v33 }
 0x553   :  { %v2126_v40 = vpack.c.bf16 %v2218_v34, %v2217_v35 }
 0x554   :  { %v2122_v56 = vpack.c.bf16 %v2213_v36, %v2212_v37  ;;  %v2221_v39 = vpop.permute.xlu1 %2220 }
 0x555   :  { %v2223_v41 = vunpack.i.h.bf16 %v2221_v39  ;;  %v2222_v42 = vunpack.i.l.bf16 %v2221_v39 }
 0x556   :  { %2123 = vmatprep.subr.bf16.mxu1 %v2122_v56 }
 0x557   :  { %2125 = vmatpush3.bf16.msra.mxu1 %v2122_v56  ;;  %v2130_v48 = vpack.c.bf16 %v2223_v41, %v2222_v42 }
 0x558   :  { %v2304_v44 = vpop.eup %2303  ;;  %2127 = vmatprep.subr.bf16.mxu1 %v2126_v40  ;;  %v2226_v52 = vpop.permute.xlu1 %2225 }
 0x559   :  { %v2306_v45 = vpop.eup %2305  ;;  %v2817_v47 = vmul.f32 %v2304_v44, %v2765_v0  ;;  %v2228_v53 = vunpack.i.h.bf16 %v2226_v52  ;;  %v2227_v55 = vunpack.i.l.bf16 %v2226_v52 }
 0x55a   :  { %v2822_v49 = vmul.f32 %v2306_v45, %v2763_v63 }
 0x55b   :  { %2129 = vmatpush3.bf16.msra.mxu1 %v2126_v40  ;;  %1934 = vmatprep.mubr.msk.f32.mxu1 %vm273_vm0, %v2817_v47  ;;  %v2136_v58 = vpack.c.bf16 %v2228_v53, %v2227_v55 }
 0x55c   :  { %2132 = vmatprep.subr.msk.bf16.mxu1 %vm2564_vm1, %v2130_v48 }
 0x55e   :  { %1935 = vmatmul.mubr.msk.f32.vlgmr.msra.gmra.mrb[16].mxu1 %vm273_vm0, %v2822_v49 }
 0x564   :  { %2135 = vmatpush3.bf16.xpose.msk.msra.mxu1 %vm2564_vm1, %v2130_v48 }
 0x565   :  { %2138 = vmatprep.subr.msk.bf16.mxu1 %vm2564_vm1, %v2136_v58 }
 0x56c   :  { %2141 = vmatpush3.bf16.xpose.msk.msra.mxu1 %vm2564_vm1, %v2136_v58 }
 0x582   :  { %v971_v61 = vpop.xlane.xlu0 %970 }
 0x583   :  { %2307 = vrcp.f32 %v971_v61 }
 0x586   :  { %v1093_v5 = vpop.permute.xlu0 %1092 }
 0x589   :  { %v974_v63 = vpop.xlane.xlu1 %973 }
 0x58a   :  { %2309 = vrcp.f32 %v974_v63  ;;  %v1097_v8 = vpop.permute.xlu0 %1096 }
 0x58d   :  { %v2308_v0 = vpop.eup %2307  ;;  %v1095_v3 = vpop.permute.xlu1 %1094 }
 0x58e   :  { %v2835_v2 = vmul.f32 %v2308_v0, %v2779_v12 }
 0x590   :  { %1937 = vmatprep.mubr.msk.f32.mxu1 %vm273_vm0, %v2835_v2 }
 0x591   :  { %v1099_v9 = vpop.permute.xlu1 %1098 }
 0x594   :  { %v2310_v4 = vpop.eup %2309 }
 0x595   :  { %v2840_v7 = vmul.f32 %v2310_v4, %v2783_v6 }
 0x597   :  { %1938 = vmatmul.mubr.msk.f32.gmra.mrb[18].mxu1 %vm273_vm0, %v2840_v7 }
 0x598   :  { %1948 = vmatprep.mubr.msk.f32.mxu1 %vm273_vm0, %v1093_v5 }
 0x59b   :  { %1949 = vmatmul.mubr.msk.f32.vlgmr.msra.gmra.mrb[20].mxu1 %vm273_vm0, %v1095_v3 }
 0x59c   :  { %1951 = vmatprep.mubr.msk.f32.mxu1 %vm273_vm0, %v1097_v8 }
 0x59f   :  { %1952 = vmatmul.mubr.msk.f32.gmra.mrb[22].mxu1 %vm273_vm0, %v1099_v9 }
 0x5bb   :  { %v659_v17 = vpop.xlane.xlu0 %658 }
 0x5bc   :  { %v669_v19 = vsub.f32 %v2796_v20, %v659_v17 }
 0x5be   :  { %v673_v27 = vmul.f32 1.442695, %v669_v19 }
 0x5bf   :  { %v665_v6 = vpop.xlane.xlu0 %664 }
 0x5c0   :  { %v671_v28 = vsub.f32 %v2802_v31, %v665_v6 }
 0x5c2   :  { %v662_v18 = vpop.xlane.xlu1 %661 }
 0x5c3   :  { %v670_v13 = vsub.f32 %v2805_v14, %v662_v18  ;;  %v668_v21 = vpop.xlane.xlu0 %667  ;;  %v677_v14 = vmul.f32 1.442695, %v671_v28 }
 0x5c4   :  { %v672_v60 = vsub.f32 %v2810_v16, %v668_v21 }
 0x5c5   :  { %v675_v22 = vmul.f32 1.442695, %v670_v13 }
 0x5c6   :  { %v679_v32 = vmul.f32 1.442695, %v672_v60 }
 0x5c7   :  { %2311 = vpow2.f32 %v675_v22 }
 0x5c8   :  { %2313 = vpow2.f32 %v673_v27 }
 0x5c9   :  { %2315 = vpow2.f32 %v679_v32 }
 0x5ca   :  { %2317 = vpow2.f32 %v677_v14 }
 0x5d1   :  { %v2871_v45 = vpop.eup %2311 }
 0x5d2   :  { %v2314_v48 = vpop.eup %2313  ;;  %v684_v52 = vsel %vm273_vm0, %v2871_v45, 0.0 }
 0x5d3   :  { %v2876_v53 = vpop.eup %2315  ;;  %v681_v55 = vsel %vm273_vm0, %v2314_v48, 0.0 }
 0x631   :  { %v2848_v10 = vpop.f32.mrb[16].mxu1 }
 0x632   :  { %v2850_v11 = vpop.f32.mrb[17].mxu1 }
 0x633   :  { %v2254_v12 = vpack.i.bf16 %v2848_v10, %v2850_v11 }
 0x66a   :  { %v2857_v15 = vpop.f32.mrb[18].mxu1 }
 0x66b   :  { %v2860_v29 = vpop.f32.mrb[19].mxu1 }
 0x66c   :  { %v2269_v30 = vpack.i.bf16 %v2857_v15, %v2860_v29 }
 0x66e   :  { %v1950_v33 = vpop.f32.mrb[20].mxu1 }
 0x66f   :  { %v1210_v20 = vmul.f32 0.17677669, %v1950_v33  ;;  %v1190_v34 = vpop.f32.mrb[21].mxu1 }
 0x670   :  { %v1209_v35 = vmul.f32 0.17677669, %v1190_v34 }
 0x671   :  { %v1214_v16 = vadd.f32 %v1210_v20, %v2651_v46 }
 0x672   :  { %v1953_v36 = vpop.f32.mrb[22].mxu1  ;;  %v1213_v37 = vadd.f32 %v1209_v35, %v2646_v43 }
 0x673   :  { %v1212_v31 = vmul.f32 0.17677669, %v1953_v36  ;;  %v1200_v56 = vpop.f32.mrb[23].mxu1  ;;  %v1220_v39 = vsel %vm273_vm0, %v1214_v16, -inf }
 0x674   :  { %v1211_v40 = vmul.f32 0.17677669, %v1200_v56  ;;  %1221 = vmax.xlane.f32.xlu1 %v1220_v39  ;;  %v1217_v41 = vsel %vm273_vm0, %v1213_v37, -inf }
 0x675   :  { %1218 = vmax.xlane.f32.xlu0 %v1217_v41  ;;  %v1216_v42 = vadd.f32 %v1212_v31, %v2664_v57  ;;  %v2879_v57 = vpop.eup %2317 }
 0x676   :  { %v1215_v44 = vadd.f32 %v1211_v40, %v2657_v50  ;;  %v690_v50 = vsel %vm273_vm0, %v2876_v53, 0.0  ;;  %v687_v58 = vsel %vm273_vm0, %v2879_v57, 0.0 }
 0x677   :  { %v1226_v46 = vsel %vm273_vm0, %v1216_v42, -inf }
 0x678   :  { %1227 = vmax.xlane.f32.xlu1 %v1226_v46  ;;  %v1223_v43 = vsel %vm273_vm0, %v1215_v44, -inf }
 0x679   :  { %1224 = vmax.xlane.f32.xlu0 %v1223_v43 }
 0x67c   :  { %685 = vadd.xlane.f32.xlu1 %v684_v52 }
 0x67d   :  { %682 = vadd.xlane.f32.xlu0 %v681_v55 }
 0x680   :  { %691 = vadd.xlane.f32.xlu1 %v690_v50 }
 0x681   :  { %688 = vadd.xlane.f32.xlu0 %v687_v58 }
 0x701   :  { %v1222_v61 = vpop.xlane.xlu1 %1221 }
 0x702   :  { %v1230_v63 = vsub.f32 %v1214_v16, %v1222_v61  ;;  %v1219_v0 = vpop.xlane.xlu0 %1218 }
 0x703   :  { %v1229_v4 = vsub.f32 %v1213_v37, %v1219_v0 }
 0x704   :  { %v1235_v5 = vmul.f32 1.442695, %v1230_v63 }
 0x705   :  { %v1233_v3 = vmul.f32 1.442695, %v1229_v4  ;;  %v1228_v8 = vpop.xlane.xlu1 %1227 }
 0x706   :  { %2319 = vpow2.f32 %v1235_v5  ;;  %v1232_v9 = vsub.f32 %v1216_v42, %v1228_v8  ;;  %v1225_v17 = vpop.xlane.xlu0 %1224 }
 0x707   :  { %2321 = vpow2.f32 %v1233_v3  ;;  %v1231_v6 = vsub.f32 %v1215_v44, %v1225_v17 }
 0x708   :  { %v1239_v18 = vmul.f32 1.442695, %v1232_v9 }
 0x709   :  { %v1237_v13 = vmul.f32 1.442695, %v1231_v6  ;;  %v686_v35 = vpop.xlane.xlu1 %685 }
 0x70a   :  { %2323 = vpow2.f32 %v1239_v18  ;;  %v683_v19 = vpop.xlane.xlu0 %682 }
 0x70b   :  { %2325 = vpow2.f32 %v1237_v13  ;;  %v1484_v13 = vld [vmem:[%s3117_s4] sm:$0xff] }
 0x70c   :  { %2327 = vrcp.f32 %v683_v19  ;;  %v1485_v19 = vld [vmem:[%s3117_s4 + $0x8] sm:$0xff] }
 0x70d   :  { %v692_v16 = vpop.xlane.xlu1 %691  ;;  %2329 = vrcp.f32 %v686_v35 }
 0x70e   :  { %v689_v36 = vpop.xlane.xlu0 %688 }
 0x70f   :  { %2331 = vrcp.f32 %v689_v36  ;;  %v1493_v36 = vld [vmem:[%s3117_s4 + $0x48] sm:$0xff] }
 0x710   :  { %v2885_v21 = vpop.eup %2319  ;;  %2333 = vrcp.f32 %v692_v16  ;;  %v1492_v16 = vld [vmem:[%s3117_s4 + $0x40] sm:$0xff] }
 0x711   :  { %v2887_v22 = vpop.eup %2321  ;;  %v1244_v60 = vsel %vm273_vm0, %v2885_v21, 0.0 }
 0x712   :  { %1245 = vadd.xlane.f32.xlu1 %v1244_v60  ;;  %v1241_v27 = vsel %vm273_vm0, %v2887_v22, 0.0  ;;  %v1487_v60 = vld [vmem:[%s3117_s4 + $0x18] sm:$0xff] }
 0x713   :  { %1242 = vadd.xlane.f32.xlu0 %v1241_v27 }
 0x714   :  { %v2893_v28 = vpop.eup %2323 }
 0x715   :  { %v2895_v32 = vpop.eup %2325  ;;  %v1250_v33 = vsel %vm273_vm0, %v2893_v28, 0.0 }
 0x716   :  { %1251 = vadd.xlane.f32.xlu1 %v1250_v33  ;;  %v1247_v14 = vsel %vm273_vm0, %v2895_v32, 0.0  ;;  %v2328_v20 = vpop.eup %2327 }
 0x717   :  { %1248 = vadd.xlane.f32.xlu0 %v1247_v14  ;;  %v2901_v34 = vmul.f32 %v2328_v20, %v2314_v48  ;;  %v2330_v52 = vpop.eup %2329  ;;  %v1490_v14 = vld [vmem:[%s3117_s4 + $0x30] sm:$0xff]  ;;  %v1491_v20 = vld [vmem:[%s3117_s4 + $0x38] sm:$0xff] }
 0x718   :  { %v2918_v63 = vmul.f32 %v2330_v52, %v2871_v45  ;;  %v2162_v35 = vpack.c.bf16 %v1491_v20, %v1490_v14 }
 0x719   :  { %1906 = vmatprep.mubr.msk.f32.mxu0 %vm273_vm0, %v2901_v34  ;;  %v2332_v55 = vpop.eup %2331 }
 0x71a   :  { %v2334_v0 = vpop.eup %2333  ;;  %v2921_v4 = vmul.f32 %v2332_v55, %v2879_v57 }
 0x71b   :  { %v2928_v8 = vmul.f32 %v2334_v0, %v2876_v53 }
 0x727   :  { %2235 = vrot.lane.b32.xlu1 %v2679_v38, %s2380_s1 }
 0x72b   :  { %2240 = vrot.lane.b32.xlu1 %v2677_v54, %s2382_s21 }
 0x72d   :  { %2230 = vrot.lane.b32.xlu0 %v2677_v54, %s2380_s1 }
 0x72f   :  { %2245 = vrot.lane.b32.xlu1 %v2679_v38, %s2382_s21 }
 0x733   :  { %2255 = vrot.lane.b32.xlu1 %v2254_v12, %s2381_s20 }
 0x79f   :  { %v1246_v37 = vpop.xlane.xlu1 %1245 }
 0x7a0   :  { %v1243_v31 = vpop.xlane.xlu0 %1242 }
 0x7a1   :  { %2335 = vrcp.f32 %v1243_v31  ;;  %v1494_v31 = vld [vmem:[%s3117_s4 + $0x50] sm:$0xff] }
 0x7a2   :  { %2337 = vrcp.f32 %v1246_v37  ;;  %v2166_v37 = vpack.c.bf16 %v1493_v36, %v1492_v16 }
 0x7a3   :  { %v1252_v56 = vpop.xlane.xlu1 %1251 }
 0x7a4   :  { %v1249_v39 = vpop.xlane.xlu0 %1248 }
 0x7a5   :  { %2339 = vrcp.f32 %v1249_v39 }
 0x7a6   :  { %2341 = vrcp.f32 %v1252_v56  ;;  %v1495_v56 = vld [vmem:[%s3117_s4 + $0x58] sm:$0xff] }
 0x7a7   :  { %v2236_v40 = vpop.permute.xlu1 %2235  ;;  %v2170_v39 = vpack.c.bf16 %v1495_v56, %v1494_v31 }
 0x7a8   :  { %v2231_v41 = vpop.permute.xlu0 %2230  ;;  %v2238_v54 = vunpack.i.h.bf16 %v2236_v40  ;;  %v2237_v42 = vunpack.i.l.bf16 %v2236_v40  ;;  %v1496_v40 = vld [vmem:[%s3117_s4 + $0x60] sm:$0xff] }
 0x7a9   :  { %v2233_v44 = vunpack.i.h.bf16 %v2231_v41  ;;  %v2232_v38 = vunpack.i.l.bf16 %v2231_v41  ;;  %v1497_v41 = vld [vmem:[%s3117_s4 + $0x68] sm:$0xff] }
 0x7aa   :  { %v2106_v11 = vpack.c.bf16 %v2238_v54, %v2237_v42  ;;  %v2174_v54 = vpack.c.bf16 %v1497_v41, %v1496_v40  ;;  %v1498_v42 = vld [vmem:[%s3117_s4 + $0x70] sm:$0xff] }
 0x7ab   :  { %v2102_v46 = vpack.c.bf16 %v2233_v44, %v2232_v38  ;;  %v2241_v10 = vpop.permute.xlu1 %2240  ;;  %v2336_v5 = vpop.eup %2335  ;;  %v1499_v44 = vld [vmem:[%s3117_s4 + $0x78] sm:$0xff] }
 0x7ac   :  { %v2243_v12 = vunpack.i.h.bf16 %v2241_v10  ;;  %v2242_v43 = vunpack.i.l.bf16 %v2241_v10  ;;  %v2338_v45 = vpop.eup %2337  ;;  %v2931_v9 = vmul.f32 %v2336_v5, %v2887_v22  ;;  %v2150_v22 = vpack.c.bf16 %v1485_v19, %v1484_v13 }
 0x7ad   :  { %2103 = vmatprep.subr.bf16.mxu0 %v2102_v46  ;;  %v2938_v57 = vmul.f32 %v2338_v45, %v2885_v21  ;;  %v1486_v21 = vld [vmem:[%s3117_s4 + $0x10] sm:$0xff]  ;;  %v2178_v38 = vpack.c.bf16 %v1499_v44, %v1498_v42 }
 0x7ae   :  { %2105 = vmatpush3.bf16.msra.mxu0 %v2102_v46  ;;  %v2142_v50 = vpack.c.bf16 %v2243_v12, %v2242_v43  ;;  %v2154_v27 = vpack.c.bf16 %v1487_v60, %v1486_v21 }
 0x7af   :  { %v2246_v48 = vpop.permute.xlu1 %2245  ;;  %2107 = vmatprep.subr.bf16.mxu0 %v2106_v11  ;;  %v2340_v17 = vpop.eup %2339 }
 0x7b0   :  { %v2248_v58 = vunpack.i.h.bf16 %v2246_v48  ;;  %v2247_v61 = vunpack.i.l.bf16 %v2246_v48  ;;  %v2342_v6 = vpop.eup %2341  ;;  %v2941_v18 = vmul.f32 %v2340_v17, %v2895_v32  ;;  %v1489_v32 = vld [vmem:[%s3117_s4 + $0x28] sm:$0xff] }
 0x7b1   :  { %v2948_v53 = vmul.f32 %v2342_v6, %v2893_v28  ;;  %v1488_v28 = vld [vmem:[%s3117_s4 + $0x20] sm:$0xff] }
 0x7b2   :  { %2109 = vmatpush3.bf16.msra.mxu0 %v2106_v11  ;;  %v2146_v3 = vpack.c.bf16 %v2248_v58, %v2247_v61  ;;  %v2158_v33 = vpack.c.bf16 %v1489_v32, %v1488_v28 }
 0x7b3   :  { %2143 = vmatprep.subr.bf16.mxu0 %v2142_v50 }
 0x7b5   :  { %1907 = vmatmul.mubr.msk.f32.vlgmr.msra.gmra.mrb[12].mxu0 %vm273_vm0, %v2918_v63 }
 0x7b6   :  { %1909 = vmatprep.mubr.msk.f32.mxu0 %vm273_vm0, %v2921_v4  ;;  %2145 = vmatpush3.bf16.msra.mxu0 %v2142_v50 }
 0x7b7   :  { %2147 = vmatprep.subr.bf16.mxu0 %v2146_v3 }
 0x7b9   :  { %1910 = vmatmul.mubr.msk.f32.gmra.mrb[14].mxu0 %vm273_vm0, %v2928_v8 }
 0x7ba   :  { %2149 = vmatpush3.bf16.msra.mxu0 %v2146_v3  ;;  %1962 = vmatprep.mubr.msk.f32.mxu0 %vm273_vm0, %v2931_v9  ;;  %v2256_v3 = vpop.permute.xlu1 %2255 }
 0x7bb   :  { %2151 = vmatprep.subr.bf16.mxu0 %v2150_v22  ;;  %v2258_v21 = vunpack.i.h.bf16 %v2256_v3 }
 0x7bd   :  { %1963 = vmatmul.mubr.msk.f32.vlgmr.msra.gmra.mrb[16].mxu0 %vm273_vm0, %v2938_v57 }
 0x7be   :  { %1965 = vmatprep.mubr.msk.f32.mxu0 %vm273_vm0, %v2941_v18  ;;  %2153 = vmatpush3.bf16.msra.mxu0 %v2150_v22  ;;  %v2257_v22 = vunpack.i.l.bf16 %v2256_v3 }
 0x7bf   :  { %2155 = vmatprep.subr.bf16.mxu0 %v2154_v27 }
 0x7c1   :  { %1966 = vmatmul.mubr.msk.f32.gmra.mrb[18].mxu0 %vm273_vm0, %v2948_v53 }
 0x7c2   :  { %2157 = vmatpush3.bf16.msra.mxu0 %v2154_v27 }
 0x7c3   :  { %2159 = vmatprep.subr.bf16.mxu0 %v2158_v33 }
 0x7c6   :  { %2161 = vmatpush3.bf16.msra.mxu0 %v2158_v33 }
 0x7c7   :  { %2163 = vmatprep.subr.bf16.mxu0 %v2162_v35 }
 0x7ca   :  { %2165 = vmatpush3.bf16.msra.mxu0 %v2162_v35 }
 0x7cb   :  { %2167 = vmatprep.subr.bf16.mxu0 %v2166_v37 }
 0x7ce   :  { %2169 = vmatpush3.bf16.msra.mxu0 %v2166_v37 }
 0x7cf   :  { %2171 = vmatprep.subr.bf16.mxu0 %v2170_v39 }
 0x7d2   :  { %2173 = vmatpush3.bf16.msra.mxu0 %v2170_v39 }
 0x7d3   :  { %2175 = vmatprep.subr.bf16.mxu0 %v2174_v54 }
 0x7d6   :  { %2177 = vmatpush3.bf16.msra.mxu0 %v2174_v54  ;;  %v1713_v54 = vld [vmem:[%s3118_s5] ss:$0 sm:$0xff] }
 0x7d7   :  { %2179 = vmatprep.subr.bf16.mxu0 %v2178_v38 }
 0x7da   :  { %2181 = vmatpush3.bf16.msra.mxu0 %v2178_v38 }
 0x888   :  { %v1908_v46 = vpop.f32.mrb[12].mxu0 }
 0x889   :  { %v795_v10 = vpop.f32.mrb[13].mxu0 }
 0x88a   :  { %v2249_v11 = vpack.i.bf16 %v1908_v46, %v795_v10  ;;  %v2352_v10 = vld [vmem:[%s3113_s0] sm:$0xff] }
 0x88c   :  { %2250 = vrot.lane.b32.xlu0 %v2249_v11, %s2382_s21  ;;  %v1911_v12 = vpop.f32.mrb[14].mxu0 }
 0x88d   :  { %v805_v43 = vpop.f32.mrb[15].mxu0 }
 0x88e   :  { %v2259_v48 = vpack.i.bf16 %v1911_v12, %v805_v43 }
 0x890   :  { %2260 = vrot.lane.b32.xlu1 %v2259_v48, %s2382_s21  ;;  %v1964_v52 = vpop.f32.mrb[16].mxu0 }
 0x891   :  { %v1351_v55 = vpop.f32.mrb[17].mxu0 }
 0x892   :  { %v2264_v50 = vpack.i.bf16 %v1964_v52, %v1351_v55  ;;  %v2353_v55 = vld [vmem:[%s3113_s0 + $0x10] sm:$0xff] }
 0x894   :  { %2265 = vrot.lane.b32.xlu0 %v2264_v50, %s2380_s1  ;;  %v1967_v58 = vpop.f32.mrb[18].mxu0 }
 0x895   :  { %v1361_v61 = vpop.f32.mrb[19].mxu0 }
 0x896   :  { %v2274_v0 = vpack.i.bf16 %v1967_v58, %v1361_v61  ;;  %v2354_v58 = vld [vmem:[%s3113_s0 + $0x18] sm:$0xff] }
 0x898   :  { %2270 = vrot.lane.b32.xlu0 %v2269_v30, %s2381_s20  ;;  %2275 = vrot.lane.b32.xlu1 %v2274_v0, %s2380_s1 }
 0x8fe   :  { %v2251_v5 = vpop.permute.xlu0 %2250 }
 0x8ff   :  { %v2253_v45 = vunpack.i.h.bf16 %v2251_v5  ;;  %v2252_v17 = vunpack.i.l.bf16 %v2251_v5 }
 0x901   :  { %v1473_v6 = vsel %vm273_vm0, %v2745_v23, %v2253_v45  ;;  %v1472_v19 = vsel %vm273_vm0, %v2747_v24, %v2252_v17 }
 0x902   :  { %v2261_v13 = vpop.permute.xlu1 %2260  ;;  %v1476_v28 = vsel %vm1410_vm2, %v1472_v19, %v2257_v22  ;;  %v1477_v32 = vsel %vm1410_vm2, %v1473_v6, %v2258_v21 }
 0x903   :  { %v2263_v30 = vunpack.i.h.bf16 %v2261_v13  ;;  %v2262_v27 = vunpack.i.l.bf16 %v2261_v13 }
 0x905   :  { %v1474_v37 = vsel %vm273_vm0, %v2751_v26, %v2262_v27  ;;  %v1475_v31 = vsel %vm273_vm0, %v2749_v25, %v2263_v30  ;;  %v2351_v25 = vld [vmem:[%s3113_s0 + $0x8] sm:$0xff] }
 0x906   :  { %v2266_v60 = vpop.permute.xlu0 %2265 }
 0x907   :  { %v2268_v15 = vunpack.i.h.bf16 %v2266_v60  ;;  %v2267_v29 = vunpack.i.l.bf16 %v2266_v60 }
 0x909   :  { %v1480_v33 = vsel %vm1415_vm3, %v1476_v28, %v2267_v29  ;;  %v1481_v23 = vsel %vm1415_vm3, %v1477_v32, %v2268_v15 }
 0x90a   :  { %v2271_v14 = vpop.permute.xlu0 %2270  ;;  %2000 = vmatprep.mubr.f32.mxu0 %v1480_v33  ;;  %v2276_v20 = vpop.permute.xlu1 %2275 }
 0x90b   :  { %v2273_v24 = vunpack.i.h.bf16 %v2271_v14  ;;  %v2272_v35 = vunpack.i.l.bf16 %v2271_v14  ;;  %v2278_v16 = vunpack.i.h.bf16 %v2276_v20  ;;  %v2277_v36 = vunpack.i.l.bf16 %v2276_v20  ;;  %2001 = vmatmul.mubr.f32.vlgmr.msra.gmra.mrb[20].mxu0 %v1481_v23 }
 0x90d   :  { %v1478_v56 = vsel %vm1410_vm2, %v1474_v37, %v2272_v35  ;;  %v1479_v39 = vsel %vm1410_vm2, %v1475_v31, %v2273_v24 }
 0x90e   :  { %v1482_v40 = vsel %vm1415_vm3, %v1478_v56, %v2277_v36  ;;  %v1483_v41 = vsel %vm1415_vm3, %v1479_v39, %v2278_v16 }
 0x90f   :  { %2003 = vmatprep.mubr.f32.mxu0 %v1482_v40 }
 0x910   :  { %2004 = vmatmul.mubr.f32.gmra.mrb[22].mxu0 %v1483_v41 }
 0x9de   :  { %v2002_v42 = vpop.f32.mrb[20].mxu0 }
 0x9df   :  { %v1579_v44 = vadd.f32 %v2002_v42, %v1713_v54  ;;  %v1573_v26 = vpop.f32.mrb[21].mxu0 }
 0x9e0   :  { %v1574_v38 = vadd.f32 %v1713_v54, %v1573_v26 }
 0x9e1   :  { %v1593_v46 = vadd.f32 %v2351_v25, %v1579_v44 }
 0x9e2   :  { %v1592_v11 = vadd.f32 %v2352_v10, %v1574_v38 }
 0x9e3   :  { %1598 = vadd.xlane.f32.xlu1 %v1593_v46  ;;  %v2005_v12 = vpop.f32.mrb[22].mxu0 }
 0x9e4   :  { %v1583_v43 = vpop.f32.mrb[23].mxu0  ;;  %1596 = vadd.xlane.f32.xlu0 %v1592_v11  ;;  %v1589_v52 = vadd.f32 %v2005_v12, %v1713_v54 }
 0x9e5   :  { %v1584_v48 = vadd.f32 %v1713_v54, %v1583_v43 }
 0x9e6   :  { %v1595_v61 = vadd.f32 %v2354_v58, %v1589_v52 }
 0x9e7   :  { %v1594_v50 = vadd.f32 %v2353_v55, %v1584_v48 }
 0x9e9   :  { %1600 = vadd.xlane.f32.xlu0 %v1594_v50 }
 0x9ed   :  { %1602 = vadd.xlane.f32.xlu0 %v1595_v61 }
 0x9f4   :  { %1372 = vrot.lane.b32.xlu1 %v2918_v63, %s2382_s21 }
 0x9f8   :  { %1374 = vrot.lane.b32.xlu1 %v2921_v4, %s2382_s21 }
 0x9fc   :  { %1376 = vrot.lane.b32.xlu1 %v2928_v8, %s2382_s21 }
 0xa00   :  { %1384 = vrot.lane.b32.xlu1 %v2822_v49, %s2381_s20 }
 0xa03   :  { %1370 = vrot.lane.b32.xlu0 %v2901_v34, %s2382_s21 }
 0xa04   :  { %1388 = vrot.lane.b32.xlu1 %v2840_v7, %s2381_s20 }
 0xa07   :  { %1382 = vrot.lane.b32.xlu0 %v2817_v47, %s2381_s20 }
 0xa08   :  { %1396 = vrot.lane.b32.xlu1 %v2938_v57, %s2380_s1 }
 0xa0b   :  { %1386 = vrot.lane.b32.xlu0 %v2835_v2, %s2381_s20 }
 0xa0f   :  { %1394 = vrot.lane.b32.xlu0 %v2931_v9, %s2380_s1 }
 0xa70   :  { %v1599_v63 = vpop.xlane.xlu1 %1598 }
 0xa71   :  { %v1606_v49 = vmul.f32 0.0078125, %v1599_v63  ;;  %v1597_v4 = vpop.xlane.xlu0 %1596 }
 0xa72   :  { %v1605_v8 = vmul.f32 0.0078125, %v1597_v4 }
 0xa73   :  { %v3059_v34 = vsub.f32 %v1593_v46, %v1606_v49 }
 0xa74   :  { %v3061_v0 = vsub.f32 %v1592_v11, %v1605_v8  ;;  %v1373_v7 = vpop.permute.xlu1 %1372 }
 0xa75   :  { %v1614_v47 = vmul.f32 %v3059_v34, %v3059_v34  ;;  %v1407_v33 = vsel %vm273_vm0, %v2711_v59, %v1373_v7 }
 0xa76   :  { %v1601_v5 = vpop.xlane.xlu0 %1600  ;;  %v1613_v57 = vmul.f32 %v3061_v0, %v3061_v0 }
 0xa77   :  { %v1607_v2 = vmul.f32 0.0078125, %v1601_v5  ;;  %1619 = vadd.xlane.f32.xlu1 %v1614_v47 }
 0xa78   :  { %v1375_v3 = vpop.permute.xlu1 %1374  ;;  %1617 = vadd.xlane.f32.xlu0 %v1613_v57 }
 0xa79   :  { %v1611_v9 = vsub.f32 %v1594_v50, %v1607_v2  ;;  %v1408_v28 = vsel %vm273_vm0, %v2713_v62, %v1375_v3 }
 0xa7a   :  { %v1603_v45 = vpop.xlane.xlu0 %1602 }
 0xa7b   :  { %v1608_v17 = vmul.f32 0.0078125, %v1603_v45  ;;  %v1615_v6 = vmul.f32 %v1611_v9, %v1611_v9 }
 0xa7c   :  { %v1377_v13 = vpop.permute.xlu1 %1376 }
 0xa7d   :  { %v1612_v19 = vsub.f32 %v1595_v61, %v1608_v17  ;;  %1621 = vadd.xlane.f32.xlu0 %v1615_v6  ;;  %v1409_v29 = vsel %vm273_vm0, %v2723_v1, %v1377_v13 }
 0xa7e   :  { %v1371_v21 = vpop.permute.xlu0 %1370 }
 0xa7f   :  { %v1616_v22 = vmul.f32 %v1612_v19, %v1612_v19  ;;  %v1406_v24 = vsel %vm273_vm0, %v2705_v51, %v1371_v21 }
 0xa80   :  { %v1385_v60 = vpop.permute.xlu1 %1384 }
 0xa81   :  { %1623 = vadd.xlane.f32.xlu1 %v1616_v22  ;;  %v1412_v14 = vsel %vm1410_vm2, %v1407_v33, %v1385_v60 }
 0xa82   :  { %v1383_v15 = vpop.permute.xlu0 %1382 }
 0xa83   :  { %v1411_v35 = vsel %vm1410_vm2, %v1406_v24, %v1383_v15 }
 0xa84   :  { %v1389_v30 = vpop.permute.xlu1 %1388 }
 0xa85   :  { %v1414_v27 = vsel %vm1410_vm2, %v1409_v29, %v1389_v30 }
 0xa86   :  { %v1387_v32 = vpop.permute.xlu0 %1386 }
 0xa87   :  { %v1413_v23 = vsel %vm1410_vm2, %v1408_v28, %v1387_v32 }
 0xa88   :  { %v1397_v20 = vpop.permute.xlu1 %1396 }
 0xa89   :  { %v1417_v1 = vsel %vm1415_vm3, %v1412_v14, %v1397_v20 }
 0xa8a   :  { %1421 = vst [vmem:[%s3120_s7 + $0x8] sm:$0xff] %v1417_v1  ;;  %v1395_v62 = vpop.permute.xlu0 %1394 }
 0xa8b   :  { %v1416_v16 = vsel %vm1415_vm3, %v1411_v35, %v1395_v62 }
 0xa8c   :  { %1420 = vst [vmem:[%s3120_s7] sm:$0xff] %v1416_v16 }
 0xa92   :  { %1400 = vrot.lane.b32.xlu1 %v2948_v53, %s2380_s1 }
 0xa93   :  { %1398 = vrot.lane.b32.xlu0 %v2941_v18, %s2380_s1 }
 0xb04   :  { %v1620_v51 = vpop.xlane.xlu1 %1619 }
 0xb05   :  { %v1626_v59 = vmul.f32 0.0078125, %v1620_v51  ;;  %v1618_v36 = vpop.xlane.xlu0 %1617 }
 0xb06   :  { %v1625_v37 = vmul.f32 0.0078125, %v1618_v36 }
 0xb07   :  { %v1630_v31 = vadd.f32 1e-05, %v1626_v59 }
 0xb08   :  { %v1629_v56 = vadd.f32 1e-05, %v1625_v37 }
 0xb09   :  { %2343 = vrsqrt.f32 %v1630_v31 }
 0xb0a   :  { %2345 = vrsqrt.f32 %v1629_v56  ;;  %v1622_v39 = vpop.xlane.xlu0 %1621 }
 0xb0b   :  { %v1627_v40 = vmul.f32 0.0078125, %v1622_v39 }
 0xb0d   :  { %v1631_v41 = vadd.f32 1e-05, %v1627_v40 }
 0xb0e   :  { %v1624_v54 = vpop.xlane.xlu1 %1623  ;;  %v1399_v42 = vpop.permute.xlu0 %1398 }
 0xb0f   :  { %2347 = vrsqrt.f32 %v1631_v41  ;;  %v1628_v44 = vmul.f32 0.0078125, %v1624_v54  ;;  %v1418_v53 = vsel %vm1415_vm3, %v1413_v23, %v1399_v42 }
 0xb10   :  { %1422 = vst [vmem:[%s3120_s7 + $0x10] sm:$0xff] %v1418_v53 }
 0xb11   :  { %v1632_v18 = vadd.f32 1e-05, %v1628_v44 }
 0xb12   :  { %v1401_v26 = vpop.permute.xlu1 %1400 }
 0xb13   :  { %v2344_v38 = vpop.eup %2343  ;;  %2349 = vrsqrt.f32 %v1632_v18  ;;  %v1419_v25 = vsel %vm1415_vm3, %v1414_v27, %v1401_v26 }
 0xb14   :  { %v2346_v46 = vpop.eup %2345  ;;  %v1638_v10 = vmul.f32 %v2344_v38, %v3059_v34  ;;  %1423 = vst [vmem:[%s3120_s7 + $0x18] sm:$0xff] %v1419_v25 }
 0xb15   :  { %v1637_v11 = vmul.f32 %v2346_v46, %v3061_v0 }
 0xb16   :  { %1642 = vst [vmem:[#allocation2 + $0x8] sm:$0xff] %v1638_v10 }
 0xb17   :  { %1641 = vst [vmem:[#allocation2] sm:$0xff] %v1637_v11 }
 0xb19   :  { %v2348_v12 = vpop.eup %2347 }
 0xb1a   :  { %v1639_v43 = vmul.f32 %v2348_v12, %v1611_v9 }
 0xb1c   :  { %1643 = vst [vmem:[#allocation2 + $0x10] sm:$0xff] %v1639_v43 }
 0xb1d   :  { %v2350_v48 = vpop.eup %2349 }
 0xb1e   :  { %v1640_v52 = vmul.f32 %v2350_v48, %v1612_v19 }
 0xb20   :  { %1644 = vst [vmem:[#allocation2 + $0x18] sm:$0xff] %v1640_v52 }
 0xb21   :  { %2366 = shalt.err (!%p2363_p4)
}
 0xb22   :  { %s2367_s24 = scalar_lea.hbm %s3119_s6, 512 }
 0xb23   :  { %p2368_p5 = scmp.ne.s32.totalorder %s3119_s6, %s2367_s24  ;;  %p2371_p6 = scmp.lt.u32.totalorder %s2367_s24, %s3119_s6 }
 0xb25   :  { %p2373_p7 = pnand %p2371_p6, %p2368_p5 }
 0xb27   :  { %2376 = shalt.err (!%p2373_p7)
}
 0xb28   :  { %s2384_s3 = smov 128   ;;  %s2385_s29 = smov 8  }
 0xb29   :  { %1656 = dma.vmem_to_hbm [thread:$0]  %s1651_s19, 512, %s3119_s6, [#allocation3], %s2384_s3, %s2384_s3, %s2385_s29  }
 0xb2a   :  { %2377 = dma.done.wait [#allocation3], 512  }
 0xb2b   :  { %2378 = vsyncadd [#allocation3], 4294966784 }
 0xb2c   :  { %1664 = vsyncpa [#allocation3], 1 }

</bundles_post_ra>
